<compile_context>
chip_gen: v7x
topology: tpu7x:2x2x1
jax: 0.10.0
libtpu: 0.0.40
codegen_flags: <defaults>
</compile_context>

<pallas_src>
import functools

import jax
import jax.numpy as jnp
from jax import lax
from jax.experimental import pallas as pl
from jax.experimental.pallas import tpu as pltpu


def _round_up(n, m):
    return ((n + m - 1) // m) * m


def lstm_kernel(x_ref, wih_ref, whh_ref, b_ref, wd_ref, bd_ref, out_ref,
                xproj_scr, h_scr, c_scr, *, T, Tc, Bt, Hp, masked, unroll):
    """One (batch tile, time chunk) grid step of the LSTM + dense head."""
    t_blk = pl.program_id(1)

    # Fresh recurrent state at the start of every batch tile's sequence.
    @pl.when(t_blk == 0)
    def _():
        h_scr[...] = jnp.zeros_like(h_scr)
        c_scr[...] = jnp.zeros_like(c_scr)

    # (1) Input projection for the whole chunk in one MXU matmul; combined bias
    #     folded in so no broadcast/add sits inside the recurrence loop.
    xproj_scr[...] = (
        jnp.dot(x_ref[...], wih_ref[...], preferred_element_type=jnp.float32)
        + b_ref[...])

    whh = whh_ref[...]                      # resident (Hp, 4Hp)
    t_base = t_blk * Tc

    # (2) Recurrence over the chunk.  Bounded unroll keeps LLO visibility
    #     without T-proportional vreg pressure / compile time.
    def step(t, carry):
        h, c = carry
        r0 = pl.multiple_of(t * Bt, Bt)     # sublane-aligned dynamic slice
        gates = (xproj_scr[pl.ds(r0, Bt), :]
                 + jnp.dot(h, whh, preferred_element_type=jnp.float32))
        # Lane-aligned gate blocks: each slice is a free view (Hp % 128 == 0).
        i = jax.nn.sigmoid(gates[:, 0 * Hp:1 * Hp])
        f = jax.nn.sigmoid(gates[:, 1 * Hp:2 * Hp])
        g = jnp.tanh(gates[:, 2 * Hp:3 * Hp])
        o = jax.nn.sigmoid(gates[:, 3 * Hp:4 * Hp])
        c_n = f * c + i * g
        h_n = o * jnp.tanh(c_n)
        if masked:
            # Time axis was zero-padded up to a chunk multiple: freeze h/c on
            # padded steps so the "last step" stays the true step T-1.
            keep = ((t_base + t) < T).astype(jnp.float32)
            h_n = keep * h_n + (1.0 - keep) * h
            c_n = keep * c_n + (1.0 - keep) * c
        return h_n, c_n

    h, c = lax.fori_loop(0, Tc, step, (h_scr[...], c_scr[...]), unroll=unroll)
    h_scr[...] = h
    c_scr[...] = c

    # (3) Dense head on the final hidden state; lane-dense (Bt, Op) store.
    @pl.when(t_blk == pl.num_programs(1) - 1)
    def _():
        out_ref[...] = (
            jnp.dot(h, wd_ref[...], preferred_element_type=jnp.float32)
            + bd_ref[...]).astype(out_ref.dtype)


def lstm_model_forward(x, w_ih, w_hh, b_ih, b_hh, w_dense, b_dense):
    """x: (B, T, F) float32.  Returns (B, output_size), matching PyTorch
    nn.LSTM(batch_first=True) + Linear(hidden, output) on the last step."""
    B, T, F = x.shape
    H = w_hh.shape[1]
    O = w_dense.shape[0]

    LANE, SUB = 128, 8
    Hp = _round_up(H, LANE)            # lane-aligned gate blocks
    Op = _round_up(O, LANE)            # lane-dense output store
    Fp = _round_up(F, SUB)

    Bp0 = _round_up(B, SUB)
    Bt = min(Bp0, 32)                  # batch tile (rows per grid block)
    Bp = _round_up(Bp0, Bt)
    nb = Bp // Bt

    Tc = min(T, 32)                    # time chunk resident in VMEM at once
    Tp = _round_up(T, Tc)
    nt = Tp // Tc
    masked = (Tp != T)

    # Time-major, zero-padded, regrouped so each (batch tile, time chunk) block
    # is a contiguous lane/sublane-aligned 2-D slab: (nb, Tp*Bt, Fp).
    x_tm = jnp.transpose(x, (1, 0, 2))                                   # (T,B,F)
    x_tm = jnp.pad(x_tm, ((0, Tp - T), (0, Bp - B), (0, Fp - F)))        # (Tp,Bp,Fp)
    x_arr = (x_tm.reshape(Tp, nb, Bt, Fp)
                 .transpose(1, 0, 2, 3)
                 .reshape(nb, Tp * Bt, Fp))

    def pad_gate_cols(w_t):
        # (rows, 4H) -> (rows, 4Hp); gate k occupies columns [k*Hp, k*Hp + H).
        rows = w_t.shape[0]
        return jnp.pad(w_t.reshape(rows, 4, H),
                       ((0, 0), (0, 0), (0, Hp - H))).reshape(rows, 4 * Hp)

    wih_t = jnp.pad(pad_gate_cols(w_ih.T), ((0, Fp - F), (0, 0)))        # (Fp, 4Hp)
    whh_t = jnp.pad(pad_gate_cols(w_hh.T), ((0, Hp - H), (0, 0)))        # (Hp, 4Hp)
    bias = pad_gate_cols((b_ih + b_hh).reshape(1, 4 * H))                # (1, 4Hp)
    wd_t = jnp.pad(w_dense.T, ((0, Hp - H), (0, Op - O)))                # (Hp, Op)
    bd = jnp.pad(b_dense.reshape(1, O), ((0, 0), (0, Op - O)))           # (1, Op)

    # Explicit VMEM budget: double-buffered x chunk & out tile, weights (x2 for
    # buffering), scratch, plus headroom.  Never set below the 32 MiB default.
    f32 = 4
    vmem_need = f32 * (
        2 * Tc * Bt * Fp
        + 2 * Bt * Op
        + 2 * (Fp * 4 * Hp + Hp * 4 * Hp + 4 * Hp + Hp * Op + Op)
        + Tc * Bt * 4 * Hp
        + 2 * Bt * Hp)
    vmem_limit = int(min(128 << 20, max(2 * vmem_need + (4 << 20), 32 << 20)))

    kern = functools.partial(lstm_kernel, T=T, Tc=Tc, Bt=Bt, Hp=Hp,
                             masked=masked, unroll=min(Tc, 8))

    out = pl.pallas_call(
        kern,
        out_shape=jax.ShapeDtypeStruct((Bp, Op), jnp.float32),
        grid=(nb, nt),
        in_specs=[
            # x: streamed per (batch tile, time chunk); leading dim squeezed.
            pl.BlockSpec((None, Tc * Bt, Fp), lambda b, t: (b, t, 0)),
            # Weights/bias: whole array, constant block index -> fetched once.
            pl.BlockSpec((Fp, 4 * Hp), lambda b, t: (0, 0)),
            pl.BlockSpec((Hp, 4 * Hp), lambda b, t: (0, 0)),
            pl.BlockSpec((1, 4 * Hp), lambda b, t: (0, 0)),
            pl.BlockSpec((Hp, Op), lambda b, t: (0, 0)),
            pl.BlockSpec((1, Op), lambda b, t: (0, 0)),
        ],
        out_specs=pl.BlockSpec((Bt, Op), lambda b, t: (b, 0)),
        scratch_shapes=[
            pltpu.VMEM((Tc * Bt, 4 * Hp), jnp.float32),   # chunk x-projection
            pltpu.VMEM((Bt, Hp), jnp.float32),            # h carry
            pltpu.VMEM((Bt, Hp), jnp.float32),            # c carry
        ],
        compiler_params=pltpu.CompilerParams(
            dimension_semantics=("parallel", "arbitrary"),
            vmem_limit_bytes=vmem_limit),
    )(x_arr, wih_t, whh_t, bias, wd_t, bd)

    return out[:B, :O]


def lstm_model_reference(x, w_ih, w_hh, b_ih, b_hh, w_dense, b_dense):
    """Pure-JAX reference matching PyTorch nn.LSTM semantics."""
    B, T, F = x.shape
    H = w_hh.shape[1]

    def step(carry, x_t):
        h, c = carry
        gates = x_t @ w_ih.T + h @ w_hh.T + b_ih + b_hh
        i = jax.nn.sigmoid(gates[:, 0 * H:1 * H])
        f = jax.nn.sigmoid(gates[:, 1 * H:2 * H])
        g = jnp.tanh(gates[:, 2 * H:3 * H])
        o = jax.nn.sigmoid(gates[:, 3 * H:4 * H])
        c = f * c + i * g
        h = o * jnp.tanh(c)
        return (h, c), h

    h0 = jnp.zeros((B, H), jnp.float32)
    c0 = jnp.zeros((B, H), jnp.float32)
    (h_T, _), _ = lax.scan(step, (h0, c0), jnp.transpose(x, (1, 0, 2)))
    return h_T @ w_dense.T + b_dense


def _make_params(key, B, T, F, H, O):
    ks = jax.random.split(key, 7)
    bound = 1.0 / jnp.sqrt(jnp.float32(H))   # PyTorch default init range
    x = jax.random.normal(ks[0], (B, T, F), jnp.float32)
    w_ih = jax.random.uniform(ks[1], (4 * H, F), jnp.float32, -bound, bound)
    w_hh = jax.random.uniform(ks[2], (4 * H, H), jnp.float32, -bound, bound)
    b_ih = jax.random.uniform(ks[3], (4 * H,), jnp.float32, -bound, bound)
    b_hh = jax.random.uniform(ks[4], (4 * H,), jnp.float32, -bound, bound)
    w_dense = jax.random.uniform(ks[5], (O, H), jnp.float32, -bound, bound)
    b_dense = jax.random.uniform(ks[6], (O,), jnp.float32, -bound, bound)
    return x, w_ih, w_hh, b_ih, b_hh, w_dense, b_dense


if __name__ == "__main__":
    key = jax.random.PRNGKey(0)
    k1, k2 = jax.random.split(key)

    # Small shapes consistent with the module's forward:
    #   x: (batch, seq, input_size), hidden_size, output_size=1.
    args = _make_params(k1, B=2, T=8, F=4, H=32, O=1)
    out = jax.block_until_ready(lstm_model_forward(*args))
    ref = lstm_model_reference(*args)
    assert out.shape == (2, 1)
    assert jnp.allclose(out, ref, atol=1e-5, rtol=1e-5), (out, ref)

    # Larger config exercising multiple batch tiles, multiple time chunks and
    # the padded-time-step masking path.
    args2 = _make_params(k2, B=40, T=50, F=7, H=64, O=1)
    out2 = jax.block_until_ready(lstm_model_forward(*args2))
    ref2 = lstm_model_reference(*args2)
    assert out2.shape == (40, 1)
    assert jnp.allclose(out2, ref2, atol=1e-4, rtol=1e-4), (out2, ref2)

    print("KERNEL_OK")
</pallas_src>

<mosaic_0001>
module attributes {stable_mosaic.version = 11 : i64} {
  func.func @lstm_kernel(%arg0: i32, %arg1: i32, %arg2: memref<1x64x8xf32, #tpu.memory_space<vmem>>, %arg3: memref<8x512xf32, #tpu.memory_space<vmem>>, %arg4: memref<128x512xf32, #tpu.memory_space<vmem>>, %arg5: memref<1x512xf32, #tpu.memory_space<vmem>>, %arg6: memref<128x128xf32, #tpu.memory_space<vmem>>, %arg7: memref<1x128xf32, #tpu.memory_space<vmem>>, %arg8: memref<8x128xf32, #tpu.memory_space<vmem>>, %arg9: memref<64x512xf32, #tpu.memory_space<vmem>>, %arg10: memref<8x128xf32, #tpu.memory_space<vmem>>, %arg11: memref<8x128xf32, #tpu.memory_space<vmem>>) attributes {dimension_semantics = [#tpu.dimension_semantics<parallel>, #tpu.dimension_semantics<arbitrary>], iteration_bounds = array<i64: 1, 1>, scalar_prefetch = 0 : i64, scratch_operands = 3 : i64, tpu.core_type = #tpu.core_type<tc>, window_params = [{transform_indices = @transform_0, window_bounds = array<i64: 1, 64, 8>}, {pipeline_mode = #tpu.pipeline_mode<synchronous>, transform_indices = @transform_1, window_bounds = array<i64: 8, 512>}, {pipeline_mode = #tpu.pipeline_mode<synchronous>, transform_indices = @transform_2, window_bounds = array<i64: 128, 512>}, {pipeline_mode = #tpu.pipeline_mode<synchronous>, transform_indices = @transform_3, window_bounds = array<i64: 1, 512>}, {pipeline_mode = #tpu.pipeline_mode<synchronous>, transform_indices = @transform_4, window_bounds = array<i64: 128, 128>}, {pipeline_mode = #tpu.pipeline_mode<synchronous>, transform_indices = @transform_5, window_bounds = array<i64: 1, 128>}, {transform_indices = @transform_6, window_bounds = array<i64: 8, 128>}]} {
    %c0_i32 = arith.constant 0 : i32
    %0 = arith.cmpi eq, %arg1, %c0_i32 : i32
    %1 = arith.extui %0 : i1 to i32
    %c0_i32_0 = arith.constant 0 : i32
    %2 = arith.cmpi ne, %1, %c0_i32_0 : i32
    scf.if %2 {
      %cst_70 = arith.constant 0.000000e+00 : f32
      %267 = vector.broadcast %cst_70 : f32 to vector<8x128xf32>
      %c0_71 = arith.constant 0 : index
      %c0_72 = arith.constant 0 : index
      %268 = vector.load %arg10[%c0_71, %c0_72] : memref<8x128xf32, #tpu.memory_space<vmem>>, vector<8x128xf32>
      tpu.vector_store %arg10[%c0_71, %c0_72], %267 {strides = array<i32>} : memref<8x128xf32, #tpu.memory_space<vmem>>, vector<8x128xf32>,
      %cst_73 = arith.constant 0.000000e+00 : f32
      %269 = vector.broadcast %cst_73 : f32 to vector<8x128xf32>
      %c0_74 = arith.constant 0 : index
      %c0_75 = arith.constant 0 : index
      %270 = vector.load %arg11[%c0_74, %c0_75] : memref<8x128xf32, #tpu.memory_space<vmem>>, vector<8x128xf32>
      tpu.vector_store %arg11[%c0_74, %c0_75], %269 {strides = array<i32>} : memref<8x128xf32, #tpu.memory_space<vmem>>, vector<8x128xf32>,
    } else {
    }
    %c0 = arith.constant 0 : index
    %c0_1 = arith.constant 0 : index
    %c0_2 = arith.constant 0 : index
    %3 = vector.load %arg2[%c0, %c0_1, %c0_2] : memref<1x64x8xf32, #tpu.memory_space<vmem>>, vector<1x64x8xf32>
    %4 = vector.shape_cast %3 : vector<1x64x8xf32> to vector<64x8xf32>
    %c0_3 = arith.constant 0 : index
    %c0_4 = arith.constant 0 : index
    %5 = vector.load %arg3[%c0_3, %c0_4] : memref<8x512xf32, #tpu.memory_space<vmem>>, vector<8x512xf32>
    %cst = arith.constant dense<0.000000e+00> : vector<64x512xf32>
    %6 = tpu.matmul %4, %5, %cst {dimension_numbers = #tpu.dot_dimension_numbers<[1], [0], [0], [1], [0, 0, 1, 1], [], []>} : vector<64x8xf32>, vector<8x512xf32>, vector<64x512xf32> -> vector<64x512xf32>
    %c0_5 = arith.constant 0 : index
    %c0_6 = arith.constant 0 : index
    %7 = vector.load %arg5[%c0_5, %c0_6] : memref<1x512xf32, #tpu.memory_space<vmem>>, vector<1x512xf32>
    %8 = vector.broadcast %7 : vector<1x512xf32> to vector<64x512xf32>
    %9 = arith.addf %6, %8 : vector<64x512xf32>
    %c0_7 = arith.constant 0 : index
    %c0_8 = arith.constant 0 : index
    %10 = vector.load %arg9[%c0_7, %c0_8] : memref<64x512xf32, #tpu.memory_space<vmem>>, vector<64x512xf32>
    tpu.vector_store %arg9[%c0_7, %c0_8], %9 {strides = array<i32>} : memref<64x512xf32, #tpu.memory_space<vmem>>, vector<64x512xf32>,
    %c0_9 = arith.constant 0 : index
    %c0_10 = arith.constant 0 : index
    %11 = vector.load %arg4[%c0_9, %c0_10] : memref<128x512xf32, #tpu.memory_space<vmem>>, vector<128x512xf32>
    %c0_11 = arith.constant 0 : index
    %c0_12 = arith.constant 0 : index
    %12 = vector.load %arg10[%c0_11, %c0_12] : memref<8x128xf32, #tpu.memory_space<vmem>>, vector<8x128xf32>
    %c0_13 = arith.constant 0 : index
    %c0_14 = arith.constant 0 : index
    %13 = vector.load %arg11[%c0_13, %c0_14] : memref<8x128xf32, #tpu.memory_space<vmem>>, vector<8x128xf32>
    %c0_i32_15 = arith.constant 0 : i32
    %c8_i32 = arith.constant 8 : i32
    %14 = arith.muli %c0_i32_15, %c8_i32 : i32
    %15 = tpu.assume_multiple %14, 8 : i32
    %16 = arith.index_cast %15 : i32 to index
    %c0_16 = arith.constant 0 : index
    %17 = vector.load %arg9[%16, %c0_16] : memref<64x512xf32, #tpu.memory_space<vmem>>, vector<8x512xf32>
    %cst_17 = arith.constant dense<0.000000e+00> : vector<8x512xf32>
    %18 = tpu.matmul %12, %11, %cst_17 {dimension_numbers = #tpu.dot_dimension_numbers<[1], [0], [0], [1], [0, 0, 1, 1], [], []>} : vector<8x128xf32>, vector<128x512xf32>, vector<8x512xf32> -> vector<8x512xf32>
    %19 = arith.addf %17, %18 : vector<8x512xf32>
    %20 = vector.extract_strided_slice %19 {offsets = [0, 0], sizes = [8, 128], strides = [1, 1]} : vector<8x512xf32> to vector<8x128xf32>
    %21 = arith.negf %20 : vector<8x128xf32>
    %22 = math.exp %21 : vector<8x128xf32>
    %cst_18 = arith.constant 1.000000e+00 : f32
    %23 = vector.broadcast %cst_18 : f32 to vector<8x128xf32>
    %24 = arith.addf %23, %22 : vector<8x128xf32>
    %25 = arith.divf %23, %24 : vector<8x128xf32>
    %26 = vector.extract_strided_slice %19 {offsets = [0, 128], sizes = [8, 128], strides = [1, 1]} : vector<8x512xf32> to vector<8x128xf32>
    %27 = arith.negf %26 : vector<8x128xf32>
    %28 = math.exp %27 : vector<8x128xf32>
    %cst_19 = arith.constant 1.000000e+00 : f32
    %29 = vector.broadcast %cst_19 : f32 to vector<8x128xf32>
    %30 = arith.addf %29, %28 : vector<8x128xf32>
    %31 = arith.divf %29, %30 : vector<8x128xf32>
    %32 = vector.extract_strided_slice %19 {offsets = [0, 256], sizes = [8, 128], strides = [1, 1]} : vector<8x512xf32> to vector<8x128xf32>
    %33 = math.tanh %32 : vector<8x128xf32>
    %34 = vector.extract_strided_slice %19 {offsets = [0, 384], sizes = [8, 128], strides = [1, 1]} : vector<8x512xf32> to vector<8x128xf32>
    %35 = arith.negf %34 : vector<8x128xf32>
    %36 = math.exp %35 : vector<8x128xf32>
    %cst_20 = arith.constant 1.000000e+00 : f32
    %37 = vector.broadcast %cst_20 : f32 to vector<8x128xf32>
    %38 = arith.addf %37, %36 : vector<8x128xf32>
    %39 = arith.divf %37, %38 : vector<8x128xf32>
    %40 = arith.mulf %31, %13 : vector<8x128xf32>
    %41 = arith.mulf %25, %33 : vector<8x128xf32>
    %42 = arith.addf %40, %41 : vector<8x128xf32>
    %43 = math.tanh %42 : vector<8x128xf32>
    %44 = arith.mulf %39, %43 : vector<8x128xf32>
    %c1_i32 = arith.constant 1 : i32
    %c8_i32_21 = arith.constant 8 : i32
    %45 = arith.muli %c1_i32, %c8_i32_21 : i32
    %46 = tpu.assume_multiple %45, 8 : i32
    %47 = arith.index_cast %46 : i32 to index
    %c0_22 = arith.constant 0 : index
    %48 = vector.load %arg9[%47, %c0_22] : memref<64x512xf32, #tpu.memory_space<vmem>>, vector<8x512xf32>
    %cst_23 = arith.constant dense<0.000000e+00> : vector<8x512xf32>
    %49 = tpu.matmul %44, %11, %cst_23 {dimension_numbers = #tpu.dot_dimension_numbers<[1], [0], [0], [1], [0, 0, 1, 1], [], []>} : vector<8x128xf32>, vector<128x512xf32>, vector<8x512xf32> -> vector<8x512xf32>
    %50 = arith.addf %48, %49 : vector<8x512xf32>
    %51 = vector.extract_strided_slice %50 {offsets = [0, 0], sizes = [8, 128], strides = [1, 1]} : vector<8x512xf32> to vector<8x128xf32>
    %52 = arith.negf %51 : vector<8x128xf32>
    %53 = math.exp %52 : vector<8x128xf32>
    %cst_24 = arith.constant 1.000000e+00 : f32
    %54 = vector.broadcast %cst_24 : f32 to vector<8x128xf32>
    %55 = arith.addf %54, %53 : vector<8x128xf32>
    %56 = arith.divf %54, %55 : vector<8x128xf32>
    %57 = vector.extract_strided_slice %50 {offsets = [0, 128], sizes = [8, 128], strides = [1, 1]} : vector<8x512xf32> to vector<8x128xf32>
    %58 = arith.negf %57 : vector<8x128xf32>
    %59 = math.exp %58 : vector<8x128xf32>
    %cst_25 = arith.constant 1.000000e+00 : f32
    %60 = vector.broadcast %cst_25 : f32 to vector<8x128xf32>
    %61 = arith.addf %60, %59 : vector<8x128xf32>
    %62 = arith.divf %60, %61 : vector<8x128xf32>
    %63 = vector.extract_strided_slice %50 {offsets = [0, 256], sizes = [8, 128], strides = [1, 1]} : vector<8x512xf32> to vector<8x128xf32>
    %64 = math.tanh %63 : vector<8x128xf32>
    %65 = vector.extract_strided_slice %50 {offsets = [0, 384], sizes = [8, 128], strides = [1, 1]} : vector<8x512xf32> to vector<8x128xf32>
    %66 = arith.negf %65 : vector<8x128xf32>
    %67 = math.exp %66 : vector<8x128xf32>
    %cst_26 = arith.constant 1.000000e+00 : f32
    %68 = vector.broadcast %cst_26 : f32 to vector<8x128xf32>
    %69 = arith.addf %68, %67 : vector<8x128xf32>
    %70 = arith.divf %68, %69 : vector<8x128xf32>
    %71 = arith.mulf %62, %42 : vector<8x128xf32>
    %72 = arith.mulf %56, %64 : vector<8x128xf32>
    %73 = arith.addf %71, %72 : vector<8x128xf32>
    %74 = math.tanh %73 : vector<8x128xf32>
    %75 = arith.mulf %70, %74 : vector<8x128xf32>
    %c2_i32 = arith.constant 2 : i32
    %c8_i32_27 = arith.constant 8 : i32
    %76 = arith.muli %c2_i32, %c8_i32_27 : i32
    %77 = tpu.assume_multiple %76, 8 : i32
    %78 = arith.index_cast %77 : i32 to index
    %c0_28 = arith.constant 0 : index
    %79 = vector.load %arg9[%78, %c0_28] : memref<64x512xf32, #tpu.memory_space<vmem>>, vector<8x512xf32>
    %cst_29 = arith.constant dense<0.000000e+00> : vector<8x512xf32>
    %80 = tpu.matmul %75, %11, %cst_29 {dimension_numbers = #tpu.dot_dimension_numbers<[1], [0], [0], [1], [0, 0, 1, 1], [], []>} : vector<8x128xf32>, vector<128x512xf32>, vector<8x512xf32> -> vector<8x512xf32>
    %81 = arith.addf %79, %80 : vector<8x512xf32>
    %82 = vector.extract_strided_slice %81 {offsets = [0, 0], sizes = [8, 128], strides = [1, 1]} : vector<8x512xf32> to vector<8x128xf32>
    %83 = arith.negf %82 : vector<8x128xf32>
    %84 = math.exp %83 : vector<8x128xf32>
    %cst_30 = arith.constant 1.000000e+00 : f32
    %85 = vector.broadcast %cst_30 : f32 to vector<8x128xf32>
    %86 = arith.addf %85, %84 : vector<8x128xf32>
    %87 = arith.divf %85, %86 : vector<8x128xf32>
    %88 = vector.extract_strided_slice %81 {offsets = [0, 128], sizes = [8, 128], strides = [1, 1]} : vector<8x512xf32> to vector<8x128xf32>
    %89 = arith.negf %88 : vector<8x128xf32>
    %90 = math.exp %89 : vector<8x128xf32>
    %cst_31 = arith.constant 1.000000e+00 : f32
    %91 = vector.broadcast %cst_31 : f32 to vector<8x128xf32>
    %92 = arith.addf %91, %90 : vector<8x128xf32>
    %93 = arith.divf %91, %92 : vector<8x128xf32>
    %94 = vector.extract_strided_slice %81 {offsets = [0, 256], sizes = [8, 128], strides = [1, 1]} : vector<8x512xf32> to vector<8x128xf32>
    %95 = math.tanh %94 : vector<8x128xf32>
    %96 = vector.extract_strided_slice %81 {offsets = [0, 384], sizes = [8, 128], strides = [1, 1]} : vector<8x512xf32> to vector<8x128xf32>
    %97 = arith.negf %96 : vector<8x128xf32>
    %98 = math.exp %97 : vector<8x128xf32>
    %cst_32 = arith.constant 1.000000e+00 : f32
    %99 = vector.broadcast %cst_32 : f32 to vector<8x128xf32>
    %100 = arith.addf %99, %98 : vector<8x128xf32>
    %101 = arith.divf %99, %100 : vector<8x128xf32>
    %102 = arith.mulf %93, %73 : vector<8x128xf32>
    %103 = arith.mulf %87, %95 : vector<8x128xf32>
    %104 = arith.addf %102, %103 : vector<8x128xf32>
    %105 = math.tanh %104 : vector<8x128xf32>
    %106 = arith.mulf %101, %105 : vector<8x128xf32>
    %c3_i32 = arith.constant 3 : i32
    %c8_i32_33 = arith.constant 8 : i32
    %107 = arith.muli %c3_i32, %c8_i32_33 : i32
    %108 = tpu.assume_multiple %107, 8 : i32
    %109 = arith.index_cast %108 : i32 to index
    %c0_34 = arith.constant 0 : index
    %110 = vector.load %arg9[%109, %c0_34] : memref<64x512xf32, #tpu.memory_space<vmem>>, vector<8x512xf32>
    %cst_35 = arith.constant dense<0.000000e+00> : vector<8x512xf32>
    %111 = tpu.matmul %106, %11, %cst_35 {dimension_numbers = #tpu.dot_dimension_numbers<[1], [0], [0], [1], [0, 0, 1, 1], [], []>} : vector<8x128xf32>, vector<128x512xf32>, vector<8x512xf32> -> vector<8x512xf32>
    %112 = arith.addf %110, %111 : vector<8x512xf32>
    %113 = vector.extract_strided_slice %112 {offsets = [0, 0], sizes = [8, 128], strides = [1, 1]} : vector<8x512xf32> to vector<8x128xf32>
    %114 = arith.negf %113 : vector<8x128xf32>
    %115 = math.exp %114 : vector<8x128xf32>
    %cst_36 = arith.constant 1.000000e+00 : f32
    %116 = vector.broadcast %cst_36 : f32 to vector<8x128xf32>
    %117 = arith.addf %116, %115 : vector<8x128xf32>
    %118 = arith.divf %116, %117 : vector<8x128xf32>
    %119 = vector.extract_strided_slice %112 {offsets = [0, 128], sizes = [8, 128], strides = [1, 1]} : vector<8x512xf32> to vector<8x128xf32>
    %120 = arith.negf %119 : vector<8x128xf32>
    %121 = math.exp %120 : vector<8x128xf32>
    %cst_37 = arith.constant 1.000000e+00 : f32
    %122 = vector.broadcast %cst_37 : f32 to vector<8x128xf32>
    %123 = arith.addf %122, %121 : vector<8x128xf32>
    %124 = arith.divf %122, %123 : vector<8x128xf32>
    %125 = vector.extract_strided_slice %112 {offsets = [0, 256], sizes = [8, 128], strides = [1, 1]} : vector<8x512xf32> to vector<8x128xf32>
    %126 = math.tanh %125 : vector<8x128xf32>
    %127 = vector.extract_strided_slice %112 {offsets = [0, 384], sizes = [8, 128], strides = [1, 1]} : vector<8x512xf32> to vector<8x128xf32>
    %128 = arith.negf %127 : vector<8x128xf32>
    %129 = math.exp %128 : vector<8x128xf32>
    %cst_38 = arith.constant 1.000000e+00 : f32
    %130 = vector.broadcast %cst_38 : f32 to vector<8x128xf32>
    %131 = arith.addf %130, %129 : vector<8x128xf32>
    %132 = arith.divf %130, %131 : vector<8x128xf32>
    %133 = arith.mulf %124, %104 : vector<8x128xf32>
    %134 = arith.mulf %118, %126 : vector<8x128xf32>
    %135 = arith.addf %133, %134 : vector<8x128xf32>
    %136 = math.tanh %135 : vector<8x128xf32>
    %137 = arith.mulf %132, %136 : vector<8x128xf32>
    %c4_i32 = arith.constant 4 : i32
    %c8_i32_39 = arith.constant 8 : i32
    %138 = arith.muli %c4_i32, %c8_i32_39 : i32
    %139 = tpu.assume_multiple %138, 8 : i32
    %140 = arith.index_cast %139 : i32 to index
    %c0_40 = arith.constant 0 : index
    %141 = vector.load %arg9[%140, %c0_40] : memref<64x512xf32, #tpu.memory_space<vmem>>, vector<8x512xf32>
    %cst_41 = arith.constant dense<0.000000e+00> : vector<8x512xf32>
    %142 = tpu.matmul %137, %11, %cst_41 {dimension_numbers = #tpu.dot_dimension_numbers<[1], [0], [0], [1], [0, 0, 1, 1], [], []>} : vector<8x128xf32>, vector<128x512xf32>, vector<8x512xf32> -> vector<8x512xf32>
    %143 = arith.addf %141, %142 : vector<8x512xf32>
    %144 = vector.extract_strided_slice %143 {offsets = [0, 0], sizes = [8, 128], strides = [1, 1]} : vector<8x512xf32> to vector<8x128xf32>
    %145 = arith.negf %144 : vector<8x128xf32>
    %146 = math.exp %145 : vector<8x128xf32>
    %cst_42 = arith.constant 1.000000e+00 : f32
    %147 = vector.broadcast %cst_42 : f32 to vector<8x128xf32>
    %148 = arith.addf %147, %146 : vector<8x128xf32>
    %149 = arith.divf %147, %148 : vector<8x128xf32>
    %150 = vector.extract_strided_slice %143 {offsets = [0, 128], sizes = [8, 128], strides = [1, 1]} : vector<8x512xf32> to vector<8x128xf32>
    %151 = arith.negf %150 : vector<8x128xf32>
    %152 = math.exp %151 : vector<8x128xf32>
    %cst_43 = arith.constant 1.000000e+00 : f32
    %153 = vector.broadcast %cst_43 : f32 to vector<8x128xf32>
    %154 = arith.addf %153, %152 : vector<8x128xf32>
    %155 = arith.divf %153, %154 : vector<8x128xf32>
    %156 = vector.extract_strided_slice %143 {offsets = [0, 256], sizes = [8, 128], strides = [1, 1]} : vector<8x512xf32> to vector<8x128xf32>
    %157 = math.tanh %156 : vector<8x128xf32>
    %158 = vector.extract_strided_slice %143 {offsets = [0, 384], sizes = [8, 128], strides = [1, 1]} : vector<8x512xf32> to vector<8x128xf32>
    %159 = arith.negf %158 : vector<8x128xf32>
    %160 = math.exp %159 : vector<8x128xf32>
    %cst_44 = arith.constant 1.000000e+00 : f32
    %161 = vector.broadcast %cst_44 : f32 to vector<8x128xf32>
    %162 = arith.addf %161, %160 : vector<8x128xf32>
    %163 = arith.divf %161, %162 : vector<8x128xf32>
    %164 = arith.mulf %155, %135 : vector<8x128xf32>
    %165 = arith.mulf %149, %157 : vector<8x128xf32>
    %166 = arith.addf %164, %165 : vector<8x128xf32>
    %167 = math.tanh %166 : vector<8x128xf32>
    %168 = arith.mulf %163, %167 : vector<8x128xf32>
    %c5_i32 = arith.constant 5 : i32
    %c8_i32_45 = arith.constant 8 : i32
    %169 = arith.muli %c5_i32, %c8_i32_45 : i32
    %170 = tpu.assume_multiple %169, 8 : i32
    %171 = arith.index_cast %170 : i32 to index
    %c0_46 = arith.constant 0 : index
    %172 = vector.load %arg9[%171, %c0_46] : memref<64x512xf32, #tpu.memory_space<vmem>>, vector<8x512xf32>
    %cst_47 = arith.constant dense<0.000000e+00> : vector<8x512xf32>
    %173 = tpu.matmul %168, %11, %cst_47 {dimension_numbers = #tpu.dot_dimension_numbers<[1], [0], [0], [1], [0, 0, 1, 1], [], []>} : vector<8x128xf32>, vector<128x512xf32>, vector<8x512xf32> -> vector<8x512xf32>
    %174 = arith.addf %172, %173 : vector<8x512xf32>
    %175 = vector.extract_strided_slice %174 {offsets = [0, 0], sizes = [8, 128], strides = [1, 1]} : vector<8x512xf32> to vector<8x128xf32>
    %176 = arith.negf %175 : vector<8x128xf32>
    %177 = math.exp %176 : vector<8x128xf32>
    %cst_48 = arith.constant 1.000000e+00 : f32
    %178 = vector.broadcast %cst_48 : f32 to vector<8x128xf32>
    %179 = arith.addf %178, %177 : vector<8x128xf32>
    %180 = arith.divf %178, %179 : vector<8x128xf32>
    %181 = vector.extract_strided_slice %174 {offsets = [0, 128], sizes = [8, 128], strides = [1, 1]} : vector<8x512xf32> to vector<8x128xf32>
    %182 = arith.negf %181 : vector<8x128xf32>
    %183 = math.exp %182 : vector<8x128xf32>
    %cst_49 = arith.constant 1.000000e+00 : f32
    %184 = vector.broadcast %cst_49 : f32 to vector<8x128xf32>
    %185 = arith.addf %184, %183 : vector<8x128xf32>
    %186 = arith.divf %184, %185 : vector<8x128xf32>
    %187 = vector.extract_strided_slice %174 {offsets = [0, 256], sizes = [8, 128], strides = [1, 1]} : vector<8x512xf32> to vector<8x128xf32>
    %188 = math.tanh %187 : vector<8x128xf32>
    %189 = vector.extract_strided_slice %174 {offsets = [0, 384], sizes = [8, 128], strides = [1, 1]} : vector<8x512xf32> to vector<8x128xf32>
    %190 = arith.negf %189 : vector<8x128xf32>
    %191 = math.exp %190 : vector<8x128xf32>
    %cst_50 = arith.constant 1.000000e+00 : f32
    %192 = vector.broadcast %cst_50 : f32 to vector<8x128xf32>
    %193 = arith.addf %192, %191 : vector<8x128xf32>
    %194 = arith.divf %192, %193 : vector<8x128xf32>
    %195 = arith.mulf %186, %166 : vector<8x128xf32>
    %196 = arith.mulf %180, %188 : vector<8x128xf32>
    %197 = arith.addf %195, %196 : vector<8x128xf32>
    %198 = math.tanh %197 : vector<8x128xf32>
    %199 = arith.mulf %194, %198 : vector<8x128xf32>
    %c6_i32 = arith.constant 6 : i32
    %c8_i32_51 = arith.constant 8 : i32
    %200 = arith.muli %c6_i32, %c8_i32_51 : i32
    %201 = tpu.assume_multiple %200, 8 : i32
    %202 = arith.index_cast %201 : i32 to index
    %c0_52 = arith.constant 0 : index
    %203 = vector.load %arg9[%202, %c0_52] : memref<64x512xf32, #tpu.memory_space<vmem>>, vector<8x512xf32>
    %cst_53 = arith.constant dense<0.000000e+00> : vector<8x512xf32>
    %204 = tpu.matmul %199, %11, %cst_53 {dimension_numbers = #tpu.dot_dimension_numbers<[1], [0], [0], [1], [0, 0, 1, 1], [], []>} : vector<8x128xf32>, vector<128x512xf32>, vector<8x512xf32> -> vector<8x512xf32>
    %205 = arith.addf %203, %204 : vector<8x512xf32>
    %206 = vector.extract_strided_slice %205 {offsets = [0, 0], sizes = [8, 128], strides = [1, 1]} : vector<8x512xf32> to vector<8x128xf32>
    %207 = arith.negf %206 : vector<8x128xf32>
    %208 = math.exp %207 : vector<8x128xf32>
    %cst_54 = arith.constant 1.000000e+00 : f32
    %209 = vector.broadcast %cst_54 : f32 to vector<8x128xf32>
    %210 = arith.addf %209, %208 : vector<8x128xf32>
    %211 = arith.divf %209, %210 : vector<8x128xf32>
    %212 = vector.extract_strided_slice %205 {offsets = [0, 128], sizes = [8, 128], strides = [1, 1]} : vector<8x512xf32> to vector<8x128xf32>
    %213 = arith.negf %212 : vector<8x128xf32>
    %214 = math.exp %213 : vector<8x128xf32>
    %cst_55 = arith.constant 1.000000e+00 : f32
    %215 = vector.broadcast %cst_55 : f32 to vector<8x128xf32>
    %216 = arith.addf %215, %214 : vector<8x128xf32>
    %217 = arith.divf %215, %216 : vector<8x128xf32>
    %218 = vector.extract_strided_slice %205 {offsets = [0, 256], sizes = [8, 128], strides = [1, 1]} : vector<8x512xf32> to vector<8x128xf32>
    %219 = math.tanh %218 : vector<8x128xf32>
    %220 = vector.extract_strided_slice %205 {offsets = [0, 384], sizes = [8, 128], strides = [1, 1]} : vector<8x512xf32> to vector<8x128xf32>
    %221 = arith.negf %220 : vector<8x128xf32>
    %222 = math.exp %221 : vector<8x128xf32>
    %cst_56 = arith.constant 1.000000e+00 : f32
    %223 = vector.broadcast %cst_56 : f32 to vector<8x128xf32>
    %224 = arith.addf %223, %222 : vector<8x128xf32>
    %225 = arith.divf %223, %224 : vector<8x128xf32>
    %226 = arith.mulf %217, %197 : vector<8x128xf32>
    %227 = arith.mulf %211, %219 : vector<8x128xf32>
    %228 = arith.addf %226, %227 : vector<8x128xf32>
    %229 = math.tanh %228 : vector<8x128xf32>
    %230 = arith.mulf %225, %229 : vector<8x128xf32>
    %c7_i32 = arith.constant 7 : i32
    %c8_i32_57 = arith.constant 8 : i32
    %231 = arith.muli %c7_i32, %c8_i32_57 : i32
    %232 = tpu.assume_multiple %231, 8 : i32
    %233 = arith.index_cast %232 : i32 to index
    %c0_58 = arith.constant 0 : index
    %234 = vector.load %arg9[%233, %c0_58] : memref<64x512xf32, #tpu.memory_space<vmem>>, vector<8x512xf32>
    %cst_59 = arith.constant dense<0.000000e+00> : vector<8x512xf32>
    %235 = tpu.matmul %230, %11, %cst_59 {dimension_numbers = #tpu.dot_dimension_numbers<[1], [0], [0], [1], [0, 0, 1, 1], [], []>} : vector<8x128xf32>, vector<128x512xf32>, vector<8x512xf32> -> vector<8x512xf32>
    %236 = arith.addf %234, %235 : vector<8x512xf32>
    %237 = vector.extract_strided_slice %236 {offsets = [0, 0], sizes = [8, 128], strides = [1, 1]} : vector<8x512xf32> to vector<8x128xf32>
    %238 = arith.negf %237 : vector<8x128xf32>
    %239 = math.exp %238 : vector<8x128xf32>
    %cst_60 = arith.constant 1.000000e+00 : f32
    %240 = vector.broadcast %cst_60 : f32 to vector<8x128xf32>
    %241 = arith.addf %240, %239 : vector<8x128xf32>
    %242 = arith.divf %240, %241 : vector<8x128xf32>
    %243 = vector.extract_strided_slice %236 {offsets = [0, 128], sizes = [8, 128], strides = [1, 1]} : vector<8x512xf32> to vector<8x128xf32>
    %244 = arith.negf %243 : vector<8x128xf32>
    %245 = math.exp %244 : vector<8x128xf32>
    %cst_61 = arith.constant 1.000000e+00 : f32
    %246 = vector.broadcast %cst_61 : f32 to vector<8x128xf32>
    %247 = arith.addf %246, %245 : vector<8x128xf32>
    %248 = arith.divf %246, %247 : vector<8x128xf32>
    %249 = vector.extract_strided_slice %236 {offsets = [0, 256], sizes = [8, 128], strides = [1, 1]} : vector<8x512xf32> to vector<8x128xf32>
    %250 = math.tanh %249 : vector<8x128xf32>
    %251 = vector.extract_strided_slice %236 {offsets = [0, 384], sizes = [8, 128], strides = [1, 1]} : vector<8x512xf32> to vector<8x128xf32>
    %252 = arith.negf %251 : vector<8x128xf32>
    %253 = math.exp %252 : vector<8x128xf32>
    %cst_62 = arith.constant 1.000000e+00 : f32
    %254 = vector.broadcast %cst_62 : f32 to vector<8x128xf32>
    %255 = arith.addf %254, %253 : vector<8x128xf32>
    %256 = arith.divf %254, %255 : vector<8x128xf32>
    %257 = arith.mulf %248, %228 : vector<8x128xf32>
    %258 = arith.mulf %242, %250 : vector<8x128xf32>
    %259 = arith.addf %257, %258 : vector<8x128xf32>
    %260 = math.tanh %259 : vector<8x128xf32>
    %261 = arith.mulf %256, %260 : vector<8x128xf32>
    %c8_i32_63 = arith.constant 8 : i32
    %c0_64 = arith.constant 0 : index
    %c0_65 = arith.constant 0 : index
    %262 = vector.load %arg10[%c0_64, %c0_65] : memref<8x128xf32, #tpu.memory_space<vmem>>, vector<8x128xf32>
    tpu.vector_store %arg10[%c0_64, %c0_65], %261 {strides = array<i32>} : memref<8x128xf32, #tpu.memory_space<vmem>>, vector<8x128xf32>,
    %c0_66 = arith.constant 0 : index
    %c0_67 = arith.constant 0 : index
    %263 = vector.load %arg11[%c0_66, %c0_67] : memref<8x128xf32, #tpu.memory_space<vmem>>, vector<8x128xf32>
    tpu.vector_store %arg11[%c0_66, %c0_67], %259 {strides = array<i32>} : memref<8x128xf32, #tpu.memory_space<vmem>>, vector<8x128xf32>,
    %c0_i32_68 = arith.constant 0 : i32
    %264 = arith.cmpi eq, %arg1, %c0_i32_68 : i32
    %265 = arith.extui %264 : i1 to i32
    %c0_i32_69 = arith.constant 0 : i32
    %266 = arith.cmpi ne, %265, %c0_i32_69 : i32
    scf.if %266 {
      %c0_70 = arith.constant 0 : index
      %c0_71 = arith.constant 0 : index
      %267 = vector.load %arg6[%c0_70, %c0_71] : memref<128x128xf32, #tpu.memory_space<vmem>>, vector<128x128xf32>
      %cst_72 = arith.constant dense<0.000000e+00> : vector<8x128xf32>
      %268 = tpu.matmul %261, %267, %cst_72 {dimension_numbers = #tpu.dot_dimension_numbers<[1], [0], [0], [1], [0, 0, 1, 1], [], []>} : vector<8x128xf32>, vector<128x128xf32>, vector<8x128xf32> -> vector<8x128xf32>
      %c0_73 = arith.constant 0 : index
      %c0_74 = arith.constant 0 : index
      %269 = vector.load %arg7[%c0_73, %c0_74] : memref<1x128xf32, #tpu.memory_space<vmem>>, vector<1x128xf32>
      %270 = vector.broadcast %269 : vector<1x128xf32> to vector<8x128xf32>
      %271 = arith.addf %268, %270 : vector<8x128xf32>
      %c0_75 = arith.constant 0 : index
      %c0_76 = arith.constant 0 : index
      %272 = vector.load %arg8[%c0_75, %c0_76] : memref<8x128xf32, #tpu.memory_space<vmem>>, vector<8x128xf32>
      tpu.vector_store %arg8[%c0_75, %c0_76], %271 {strides = array<i32>} : memref<8x128xf32, #tpu.memory_space<vmem>>, vector<8x128xf32>,
    } else {
    }
    return
  }
  func.func @transform_0(%arg0: i32, %arg1: i32) -> (i32, i32, i32) {
    %c0_i32 = arith.constant 0 : i32
    %c0_i32_0 = arith.constant 0 : i32
    return %arg0, %arg1, %c0_i32 : i32, i32, i32
  }
  func.func @transform_1(%arg0: i32, %arg1: i32) -> (i32, i32) {
    %c0_i32 = arith.constant 0 : i32
    %c0_i32_0 = arith.constant 0 : i32
    %c0_i32_1 = arith.constant 0 : i32
    return %c0_i32, %c0_i32_0 : i32, i32
  }
  func.func @transform_2(%arg0: i32, %arg1: i32) -> (i32, i32) {
    %c0_i32 = arith.constant 0 : i32
    %c0_i32_0 = arith.constant 0 : i32
    %c0_i32_1 = arith.constant 0 : i32
    return %c0_i32, %c0_i32_0 : i32, i32
  }
  func.func @transform_3(%arg0: i32, %arg1: i32) -> (i32, i32) {
    %c0_i32 = arith.constant 0 : i32
    %c0_i32_0 = arith.constant 0 : i32
    %c0_i32_1 = arith.constant 0 : i32
    return %c0_i32, %c0_i32_0 : i32, i32
  }
  func.func @transform_4(%arg0: i32, %arg1: i32) -> (i32, i32) {
    %c0_i32 = arith.constant 0 : i32
    %c0_i32_0 = arith.constant 0 : i32
    %c0_i32_1 = arith.constant 0 : i32
    return %c0_i32, %c0_i32_0 : i32, i32
  }
  func.func @transform_5(%arg0: i32, %arg1: i32) -> (i32, i32) {
    %c0_i32 = arith.constant 0 : i32
    %c0_i32_0 = arith.constant 0 : i32
    %c0_i32_1 = arith.constant 0 : i32
    return %c0_i32, %c0_i32_0 : i32, i32
  }
  func.func @transform_6(%arg0: i32, %arg1: i32) -> (i32, i32) {
    %c0_i32 = arith.constant 0 : i32
    %c0_i32_0 = arith.constant 0 : i32
    return %arg0, %c0_i32 : i32, i32
  }
}

</mosaic_0001>

<bundles_post_ra>
// kernel: tpu_custom_call.1
= control target key start
LH: loop header
LB: loop body
LE: loop exit
PB: predicated region body
PF: predicated region fallthrough
CT: control target
= control target key end

     0   :  { %11 = vsyncpa [#allocation6], 0  ;;  %s3444_s0 = inlined_call_operand.vmem [shape: f32[1,64,8], index: 0, kind: input, shape index: {}]   ;;  %s3445_s1 = inlined_call_operand.vmem [shape: f32[8,512], index: 1, kind: input, shape index: {}]   ;;  %s3446_s2 = inlined_call_operand.hbm [shape: f32[128,512], index: 2, kind: input, shape index: {}]   ;;  %s3447_s3 = inlined_call_operand.vmem [shape: f32[1,512], index: 3, kind: input, shape index: {}]   ;;  %s3448_s4 = inlined_call_operand.hbm [shape: f32[128,128], index: 4, kind: input, shape index: {}]   ;;  %s3449_s5 = inlined_call_operand.vmem [shape: f32[1,128], index: 5, kind: input, shape index: {}]   ;;  %s3450_s6 = inlined_call_operand.hbm [shape: f32[8,128], index: 6, kind: output, shape index: {}]  }
   0x1   :  { %12 = vsyncpa [#allocation9], 0 }
   0x2   :  { %13 = vsyncpa [#allocation7], 0  ;;  %s2882_s21 = smov [#allocation5]   ;;  %s2810_s25 = scalar_lea.hbm %s3446_s2, 8192 }
   0x3   :  { %s23_s22 = sshll.u32 %s2882_s21, 4  ;;  %p2811_p0 = scmp.ne.s32.totalorder %s3446_s2, %s2810_s25  ;;  %s24_s22 = int_to_ptr.vmem [resolvable:$true] %s23_s22 }
   0x4   :  { %p2814_p1 = scmp.lt.u32.totalorder %s2810_s25, %s3446_s2 }
   0x6   :  { %p2816_p2 = pnand %p2814_p1, %p2811_p0 }
   0x8   :  { %2819 = shalt.err (!%p2816_p2)
}
   0x9   :  { %s2820_s30 = scalar_lea.vmem %s24_s22, 8192  ;;  %p2825_p4 = scmp.lt.s32.totalorder %s24_s22, %s24_s22 }
   0xa   :  { %p2821_p3 = scmp.ne.s32.totalorder %s24_s22, %s2820_s30  ;;  %p2826_p5 = scmp.lt.s32.totalorder %s2820_s30, %s2820_s30 }
   0xc   :  { %p2827_p6 = por %p2826_p5, %p2825_p4 }
   0xe   :  { %p2828_p7 = pnand %p2827_p6, %p2821_p3 }
  0x10   :  { %2831 = shalt.err (!%p2828_p7)
}
  0x11   :  { %s2883_s7 = smov 512   ;;  %s2884_s8 = smov 32  }
  0x12   :  { %29 = dma.hbm_to_vmem [thread:$0]  %s3446_s2, 8192, %s24_s22, [#allocation6], %s2883_s7, %s2883_s7, %s2884_s8  }
  0x13   :  { %s2885_s11 = smov [#allocation8]   ;;  %s2832_s15 = scalar_lea.hbm %s3448_s4, 2048 }
  0x14   :  { %s37_s12 = sshll.u32 %s2885_s11, 4  ;;  %p2833_p8 = scmp.ne.s32.totalorder %s3448_s4, %s2832_s15  ;;  %s38_s12 = int_to_ptr.vmem [resolvable:$true] %s37_s12 }
  0x15   :  { %p2836_p9 = scmp.lt.u32.totalorder %s2832_s15, %s3448_s4 }
  0x17   :  { %p2838_p10 = pnand %p2836_p9, %p2833_p8 }
  0x19   :  { %2841 = shalt.err (!%p2838_p10)
}
  0x1a   :  { %s2842_s20 = scalar_lea.vmem %s38_s12, 2048  ;;  %p2847_p12 = scmp.lt.s32.totalorder %s38_s12, %s38_s12 }
  0x1b   :  { %p2843_p11 = scmp.ne.s32.totalorder %s38_s12, %s2842_s20  ;;  %p2848_p13 = scmp.lt.s32.totalorder %s2842_s20, %s2842_s20 }
  0x1d   :  { %p2849_p0 = por %p2848_p13, %p2847_p12 }
  0x1f   :  { %p2850_p1 = pnand %p2849_p0, %p2843_p11 }
  0x21   :  { %2853 = shalt.err (!%p2850_p1)
}
  0x22   :  { %s2886_s2 = smov 128   ;;  %s2887_s21 = smov 8  }
  0x23   :  { %43 = dma.hbm_to_vmem [thread:$0]  %s3448_s4, 2048, %s38_s12, [#allocation9], %s2886_s2, %s2886_s2, %s2887_s21  }
  0x24   :  { %2876 = dma.done.wait [#allocation6], 8192  }
  0x25   :  { %2877 = vsyncadd [#allocation6], 4294959104 }
  0x26   :  { %2878 = dma.done.wait [#allocation9], 2048  }
  0x27   :  { %2879 = vsyncadd [#allocation9], 4294965248  ;;  %v2888_v0 = vmov 0.0   ;;  %v67_v1 = vld [vmem:[%s3445_s1 + $0x8] sm:$0xff]  ;;  %v69_v2 = vld [vmem:[%s3445_s1 + $0x18] sm:$0xff]  ;;  %vm92_vm0 = vcmask 64512  }
  0x28   :  { %181 = vmatprep.mubr.f32.mxu0 %v2888_v0  ;;  %294 = vmatprep.mubr.f32.mxu1 %v2888_v0  ;;  %v66_v3 = vld [vmem:[%s3445_s1] sm:$0xff]  ;;  %v68_v4 = vld [vmem:[%s3445_s1 + $0x10] sm:$0xff]  ;;  %v376_v6 = vld [vmem:[#allocation5 + $0x8] sm:$0xff]  ;;  %vm2890_vm1 = vmmov 0   ;;  %s2891_s23 = smov [#allocation10]  }
  0x29   :  { %117 = vmatprep.subr.mxu0 %v67_v1  ;;  %230 = vmatprep.subr.mxu1 %v69_v2  ;;  %v58_v5 = vld [vmem:[%s3444_s0] sm:$0xff]  ;;  %v380_v7 = vld [vmem:[#allocation5 + $0x28] sm:$0xff]  ;;  %v378_v8 = vld [vmem:[#allocation5 + $0x18] sm:$0xff]  ;;  %s1962_s24 = sshll.u32 %s2891_s23, 4  ;;  %s1963_s24 = int_to_ptr.vmem [resolvable:$true] %s1962_s24 }
  0x2a   :  { %118 = vmatpush1.msra.mxu0 %v66_v3  ;;  %231 = vmatpush1.msra.mxu1 %v68_v4  ;;  %v382_v9 = vld [vmem:[#allocation5 + $0x38] sm:$0xff]  ;;  %v2970_v10 = vpack.c.bf16 %v380_v7, %v376_v6  ;;  %v375_v12 = vld [vmem:[#allocation5] sm:$0xff]  ;;  %v377_v14 = vld [vmem:[#allocation5 + $0x10] sm:$0xff]  ;;  %s2854_s25 = scalar_lea.vmem %s1963_s24, 128  ;;  %p2859_p3 = scmp.lt.s32.totalorder %s1963_s24, %s1963_s24 }
  0x2b   :  { %1979 = vmatmul.mubr.msk.f32.vlgmr.msra.gmra.mrb[0].mxu0 %vm92_vm0, %v58_v5  ;;  %1987 = vmatmul.mubr.msk.f32.vlgmr.msra.gmra.mrb[0].mxu1 %vm92_vm0, %v58_v5  ;;  %v2972_v11 = vpack.c.bf16 %v382_v9, %v378_v8  ;;  %v379_v13 = vld [vmem:[#allocation5 + $0x20] sm:$0xff]  ;;  %v381_v16 = vld [vmem:[#allocation5 + $0x30] sm:$0xff]  ;;  %v59_v17 = vld [vmem:[%s3444_s0 + $0x8] sm:$0xff]  ;;  %p2855_p2 = scmp.ne.s32.totalorder %s1963_s24, %s2854_s25  ;;  %p2860_p4 = scmp.lt.s32.totalorder %s2854_s25, %s2854_s25 }
  0x2c   :  { %v2974_v15 = vpack.c.bf16 %v379_v13, %v375_v12  ;;  %187 = vmatprep.mubr.f32.mxu0 %v2888_v0  ;;  %300 = vmatprep.mubr.f32.mxu1 %v2888_v0  ;;  %v384_v18 = vld [vmem:[#allocation5 + $0x48] sm:$0xff]  ;;  %v2983_v19 = vpack.c.bf16 %v381_v16, %v377_v14  ;;  %v386_v21 = vld [vmem:[#allocation5 + $0x58] sm:$0xff]  ;;  %v383_v25 = vld [vmem:[#allocation5 + $0x40] sm:$0xff] }
  0x2d   :  { %2073 = vmatprep.subr.bf16.mxu0 %v2970_v10  ;;  %2105 = vmatprep.subr.bf16.mxu1 %v2972_v11  ;;  %v388_v20 = vld [vmem:[#allocation5 + $0x68] sm:$0xff]  ;;  %v390_v22 = vld [vmem:[#allocation5 + $0x78] sm:$0xff]  ;;  %v387_v26 = vld [vmem:[#allocation5 + $0x60] sm:$0xff]  ;;  %p2861_p5 = por %p2860_p4, %p2859_p3 }
  0x2e   :  { %2075 = vmatpush1.bf16.msra.mxu0 %v2974_v15  ;;  %v2986_v23 = vpack.c.bf16 %v388_v20, %v384_v18  ;;  %v2988_v24 = vpack.c.bf16 %v390_v22, %v386_v21  ;;  %v385_v27 = vld [vmem:[#allocation5 + $0x50] sm:$0xff]  ;;  %2107 = vmatpush1.bf16.msra.mxu1 %v2983_v19  ;;  %v2992_v28 = vpack.c.bf16 %v387_v26, %v383_v25  ;;  %v392_v31 = vld [vmem:[#allocation5 + $0x88] sm:$0xff]  ;;  %v394_v34 = vld [vmem:[#allocation5 + $0x98] sm:$0xff] }
  0x2f   :  { %1980 = vmatmul.mubr.msk.f32.gmra.mrb[2].mxu0 %vm92_vm0, %v59_v17  ;;  %v389_v29 = vld [vmem:[#allocation5 + $0x70] sm:$0xff]  ;;  %1988 = vmatmul.mubr.msk.f32.gmra.mrb[2].mxu1 %vm92_vm0, %v59_v17  ;;  %v396_v33 = vld [vmem:[#allocation5 + $0xa8] sm:$0xff]  ;;  %v398_v35 = vld [vmem:[#allocation5 + $0xb8] sm:$0xff]  ;;  %p2862_p6 = pnand %p2861_p5, %p2855_p2 }
  0x30   :  { %v60_v30 = vld [vmem:[%s3444_s0 + $0x10] sm:$0xff]  ;;  %2077 = vmatprep.subr.bf16.mxu0 %v2986_v23  ;;  %v2999_v32 = vpack.c.bf16 %v389_v29, %v385_v27  ;;  %2109 = vmatprep.subr.bf16.mxu1 %v2988_v24  ;;  %v3003_v36 = vpack.c.bf16 %v396_v33, %v392_v31  ;;  %v3005_v37 = vpack.c.bf16 %v398_v35, %v394_v34  ;;  %v391_v38 = vld [vmem:[#allocation5 + $0x80] sm:$0xff]  ;;  %v61_v43 = vld [vmem:[%s3444_s0 + $0x18] sm:$0xff] }
  0x31   :  { %193 = vmatprep.mubr.f32.mxu0 %v2888_v0  ;;  %v395_v39 = vld [vmem:[#allocation5 + $0xa0] sm:$0xff]  ;;  %v393_v40 = vld [vmem:[#allocation5 + $0x90] sm:$0xff]  ;;  %306 = vmatprep.mubr.f32.mxu1 %v2888_v0  ;;  %v400_v44 = vld [vmem:[#allocation5 + $0xc8] sm:$0xff] }
  0x32   :  { %2079 = vmatpush1.bf16.msra.mxu0 %v2992_v28  ;;  %v3009_v41 = vpack.c.bf16 %v395_v39, %v391_v38  ;;  %v397_v42 = vld [vmem:[#allocation5 + $0xb0] sm:$0xff]  ;;  %2111 = vmatpush1.bf16.msra.mxu1 %v2999_v32  ;;  %v404_v46 = vld [vmem:[#allocation5 + $0xe8] sm:$0xff]  ;;  %v402_v47 = vld [vmem:[#allocation5 + $0xd8] sm:$0xff] }
  0x33   :  { %1981 = vmatmul.mubr.msk.f32.gmra.mrb[4].mxu0 %vm92_vm0, %v60_v30  ;;  %v3016_v45 = vpack.c.bf16 %v397_v42, %v393_v40  ;;  %v406_v48 = vld [vmem:[#allocation5 + $0xf8] sm:$0xff]  ;;  %1989 = vmatmul.mubr.msk.f32.gmra.mrb[4].mxu1 %vm92_vm0, %v60_v30  ;;  %v3020_v49 = vpack.c.bf16 %v404_v46, %v400_v44  ;;  %v399_v50 = vld [vmem:[#allocation5 + $0xc0] sm:$0xff]  ;;  %v401_v52 = vld [vmem:[#allocation5 + $0xd0] sm:$0xff] }
  0x34   :  { %2081 = vmatprep.subr.bf16.mxu0 %v3003_v36  ;;  %v403_v51 = vld [vmem:[#allocation5 + $0xe0] sm:$0xff]  ;;  %2113 = vmatprep.subr.bf16.mxu1 %v3005_v37  ;;  %v3024_v53 = vpack.c.bf16 %v406_v48, %v402_v47  ;;  %v405_v54 = vld [vmem:[#allocation5 + $0xf0] sm:$0xff]  ;;  %v408_v55 = vld [vmem:[#allocation5 + $0x108] sm:$0xff] }
  0x35   :  { %199 = vmatprep.mubr.f32.mxu0 %v2888_v0  ;;  %312 = vmatprep.mubr.f32.mxu1 %v2888_v0  ;;  %v3028_v56 = vpack.c.bf16 %v403_v51, %v399_v50  ;;  %v412_v57 = vld [vmem:[#allocation5 + $0x128] sm:$0xff]  ;;  %v410_v58 = vld [vmem:[#allocation5 + $0x118] sm:$0xff]  ;;  %v3032_v60 = vpack.c.bf16 %v405_v54, %v401_v52  ;;  %v407_v61 = vld [vmem:[#allocation5 + $0x100] sm:$0xff] }
  0x36   :  { %2083 = vmatpush1.bf16.msra.mxu0 %v3009_v41  ;;  %v414_v59 = vld [vmem:[#allocation5 + $0x138] sm:$0xff]  ;;  %2115 = vmatpush1.bf16.msra.mxu1 %v3016_v45  ;;  %v411_v62 = vld [vmem:[#allocation5 + $0x120] sm:$0xff]  ;;  %v3039_v1 = vpack.c.bf16 %v412_v57, %v408_v55  ;;  %v409_v2 = vld [vmem:[#allocation5 + $0x110] sm:$0xff] }
  0x37   :  { %1982 = vmatmul.mubr.msk.f32.gmra.mrb[6].mxu0 %vm92_vm0, %v61_v43  ;;  %1990 = vmatmul.mubr.msk.f32.gmra.mrb[6].mxu1 %vm92_vm0, %v61_v43  ;;  %v62_v63 = vld [vmem:[%s3444_s0 + $0x20] sm:$0xff]  ;;  %v413_v3 = vld [vmem:[#allocation5 + $0x130] sm:$0xff]  ;;  %v3043_v4 = vpack.c.bf16 %v414_v59, %v410_v58  ;;  %v416_v5 = vld [vmem:[#allocation5 + $0x148] sm:$0xff]  ;;  %v3047_v7 = vpack.c.bf16 %v411_v62, %v407_v61  ;;  %v72_v62 = vlaneseq }
  0x38   :  { %2085 = vmatprep.subr.bf16.mxu0 %v3020_v49  ;;  %2117 = vmatprep.subr.bf16.mxu1 %v3024_v53  ;;  %v420_v6 = vld [vmem:[#allocation5 + $0x168] sm:$0xff]  ;;  %v418_v8 = vld [vmem:[#allocation5 + $0x158] sm:$0xff]  ;;  %v3051_v12 = vpack.c.bf16 %v413_v3, %v409_v2  ;;  %v415_v13 = vld [vmem:[#allocation5 + $0x140] sm:$0xff] }
  0x39   :  { %205 = vmatprep.mubr.f32.mxu0 %v2888_v0  ;;  %318 = vmatprep.mubr.f32.mxu1 %v2888_v0  ;;  %v422_v9 = vld [vmem:[#allocation5 + $0x178] sm:$0xff]  ;;  %v419_v14 = vld [vmem:[#allocation5 + $0x160] sm:$0xff]  ;;  %v63_v16 = vld [vmem:[%s3444_s0 + $0x28] sm:$0xff]  ;;  %v3058_v17 = vpack.c.bf16 %v420_v6, %v416_v5 }
  0x3a   :  { %2087 = vmatpush1.bf16.msra.mxu0 %v3028_v56  ;;  %2119 = vmatpush1.bf16.msra.mxu1 %v3032_v60  ;;  %v417_v18 = vld [vmem:[#allocation5 + $0x150] sm:$0xff]  ;;  %v3062_v21 = vpack.c.bf16 %v422_v9, %v418_v8  ;;  %v424_v22 = vld [vmem:[#allocation5 + $0x188] sm:$0xff]  ;;  %v3066_v26 = vpack.c.bf16 %v419_v14, %v415_v13  ;;  %v426_v27 = vld [vmem:[#allocation5 + $0x198] sm:$0xff] }
  0x3b   :  { %1983 = vmatmul.mubr.msk.f32.gmra.mrb[8].mxu0 %vm92_vm0, %v62_v63  ;;  %1991 = vmatmul.mubr.msk.f32.gmra.mrb[8].mxu1 %vm92_vm0, %v62_v63  ;;  %v421_v20 = vld [vmem:[#allocation5 + $0x170] sm:$0xff]  ;;  %v428_v25 = vld [vmem:[#allocation5 + $0x1a8] sm:$0xff]  ;;  %v430_v29 = vld [vmem:[#allocation5 + $0x1b8] sm:$0xff]  ;;  %v73_v63 = vshrl.u32 %v72_v62, 7 }
  0x3c   :  { %2089 = vmatprep.subr.bf16.mxu0 %v3039_v1  ;;  %2121 = vmatprep.subr.bf16.mxu1 %v3043_v4  ;;  %v3070_v30 = vpack.c.bf16 %v421_v20, %v417_v18  ;;  %v423_v31 = vld [vmem:[#allocation5 + $0x180] sm:$0xff]  ;;  %v64_v34 = vld [vmem:[%s3444_s0 + $0x30] sm:$0xff]  ;;  %v3077_v35 = vpack.c.bf16 %v428_v25, %v424_v22  ;;  %v3081_v40 = vpack.c.bf16 %v430_v29, %v426_v27  ;;  %v432_v42 = vld [vmem:[#allocation5 + $0x1c8] sm:$0xff] }
  0x3d   :  { %211 = vmatprep.mubr.f32.mxu0 %v2888_v0  ;;  %324 = vmatprep.mubr.f32.mxu1 %v2888_v0  ;;  %v427_v33 = vld [vmem:[#allocation5 + $0x1a0] sm:$0xff]  ;;  %v425_v38 = vld [vmem:[#allocation5 + $0x190] sm:$0xff]  ;;  %v436_v43 = vld [vmem:[#allocation5 + $0x1e8] sm:$0xff]  ;;  %v74_v2 = vsub.s32 0, %v73_v63  ;;  %v78_v5 = vsub.s32 1, %v73_v63  ;;  %v86_v13 = vsub.s32 3, %v73_v63 }
  0x3e   :  { %2091 = vmatpush1.bf16.msra.mxu0 %v3047_v7  ;;  %2123 = vmatpush1.bf16.msra.mxu1 %v3051_v12  ;;  %v429_v39 = vld [vmem:[#allocation5 + $0x1b0] sm:$0xff]  ;;  %v3085_v44 = vpack.c.bf16 %v427_v33, %v423_v31  ;;  %v434_v46 = vld [vmem:[#allocation5 + $0x1d8] sm:$0xff]  ;;  %v431_v50 = vld [vmem:[#allocation5 + $0x1c0] sm:$0xff]  ;;  %v3096_v54 = vpack.c.bf16 %v436_v43, %v432_v42  ;;  %v82_v31 = vsub.s32 2, %v73_v63 }
  0x3f   :  { %1984 = vmatmul.mubr.msk.f32.gmra.mrb[10].mxu0 %vm92_vm0, %v63_v16  ;;  %1992 = vmatmul.mubr.msk.f32.gmra.mrb[10].mxu1 %vm92_vm0, %v63_v16  ;;  %v438_v47 = vld [vmem:[#allocation5 + $0x1f8] sm:$0xff]  ;;  %v3089_v48 = vpack.c.bf16 %v429_v39, %v425_v38  ;;  %v435_v51 = vld [vmem:[#allocation5 + $0x1e0] sm:$0xff]  ;;  %v433_v55 = vld [vmem:[#allocation5 + $0x1d0] sm:$0xff] }
  0x40   :  { %2093 = vmatprep.subr.bf16.mxu0 %v3058_v17  ;;  %2125 = vmatprep.subr.bf16.mxu1 %v3062_v21  ;;  %v65_v52 = vld [vmem:[%s3444_s0 + $0x38] sm:$0xff]  ;;  %v437_v57 = vld [vmem:[#allocation5 + $0x1f0] sm:$0xff]  ;;  %v3100_v58 = vpack.c.bf16 %v438_v47, %v434_v46  ;;  %v3104_v59 = vpack.c.bf16 %v435_v51, %v431_v50  ;;  %v70_v3 = vld [vmem:[%s3447_s3] sm:$0xf] }
  0x41   :  { %217 = vmatprep.mubr.f32.mxu0 %v2888_v0  ;;  %330 = vmatprep.mubr.f32.mxu1 %v2888_v0  ;;  %v3108_v61 = vpack.c.bf16 %v437_v57, %v433_v55  ;;  %v3158_v6 = vrot.slane %v70_v3, %v74_v2  ;;  %v3160_v8 = vrot.slane %v70_v3, %v78_v5 }
  0x42   :  { %2095 = vmatpush1.bf16.msra.mxu0 %v3066_v26  ;;  %2127 = vmatpush1.bf16.msra.mxu1 %v3070_v30  ;;  %v3164_v29 = vrot.slane %v70_v3, %v86_v13 }
  0x43   :  { %1985 = vmatmul.mubr.msk.f32.gmra.mrb[12].mxu0 %vm92_vm0, %v64_v34  ;;  %1993 = vmatmul.mubr.msk.f32.gmra.mrb[12].mxu1 %vm92_vm0, %v64_v34  ;;  %v3167_v34 = vrot.slane %v70_v3, %v82_v31 }
  0x44   :  { %2097 = vmatprep.subr.bf16.mxu0 %v3077_v35  ;;  %2129 = vmatprep.subr.bf16.mxu1 %v3081_v40 }
  0x45   :  { %223 = vmatprep.mubr.f32.mxu0 %v2888_v0  ;;  %336 = vmatprep.mubr.f32.mxu1 %v2888_v0 }
  0x46   :  { %2099 = vmatpush1.bf16.msra.mxu0 %v3085_v44  ;;  %2131 = vmatpush1.bf16.msra.mxu1 %v3089_v48 }
  0x47   :  { %1986 = vmatmul.mubr.msk.f32.gmra.mrb[14].mxu0 %vm92_vm0, %v65_v52  ;;  %1994 = vmatmul.mubr.msk.f32.gmra.mrb[14].mxu1 %vm92_vm0, %v65_v52 }
  0x48   :  { %2101 = vmatprep.subr.bf16.mxu0 %v3096_v54  ;;  %2133 = vmatprep.subr.bf16.mxu1 %v3100_v58 }
  0x49   :  { %512 = vmatprep.mubr.f32.mxu0 %v2888_v0  ;;  %583 = vmatprep.mubr.f32.mxu1 %v2888_v0 }
  0x4a   :  { %2103 = vmatpush1.bf16.msra.mxu0 %v3104_v59  ;;  %2135 = vmatpush1.bf16.msra.mxu1 %v3108_v61 }
  0x4b   :  { %2137 = vmatprep.subr.bf16.mxu0 %v2970_v10  ;;  %2169 = vmatprep.subr.bf16.mxu1 %v2972_v11 }
  0x4d   :  { %513 = vmatmul.mubr.f32.vlgmr.msra.gmra.mrb[0].mxu0 %v2888_v0  ;;  %584 = vmatmul.mubr.f32.vlgmr.msra.gmra.mrb[0].mxu1 %v2888_v0 }
  0x4e   :  { %2139 = vmatpush1.bf16.msra.mxu0 %v2974_v15  ;;  %2171 = vmatpush1.bf16.msra.mxu1 %v2983_v19 }
  0x4f   :  { %2141 = vmatprep.subr.bf16.mxu0 %v2986_v23  ;;  %2173 = vmatprep.subr.bf16.mxu1 %v2988_v24 }
  0x50   :  { %689 = vmatprep.mubr.f32.mxu0 %v2888_v0  ;;  %760 = vmatprep.mubr.f32.mxu1 %v2888_v0 }
  0x52   :  { %2143 = vmatpush1.bf16.msra.mxu0 %v2992_v28  ;;  %2175 = vmatpush1.bf16.msra.mxu1 %v2999_v32 }
  0x53   :  { %2145 = vmatprep.subr.bf16.mxu0 %v3003_v36  ;;  %2177 = vmatprep.subr.bf16.mxu1 %v3005_v37 }
  0x56   :  { %2147 = vmatpush1.bf16.msra.mxu0 %v3009_v41  ;;  %2179 = vmatpush1.bf16.msra.mxu1 %v3016_v45 }
  0x57   :  { %2149 = vmatprep.subr.bf16.mxu0 %v3020_v49  ;;  %2181 = vmatprep.subr.bf16.mxu1 %v3024_v53 }
  0x5a   :  { %2151 = vmatpush1.bf16.msra.mxu0 %v3028_v56  ;;  %2183 = vmatpush1.bf16.msra.mxu1 %v3032_v60 }
  0x5b   :  { %2153 = vmatprep.subr.bf16.mxu0 %v3039_v1  ;;  %2185 = vmatprep.subr.bf16.mxu1 %v3043_v4 }
  0x5e   :  { %2155 = vmatpush1.bf16.msra.mxu0 %v3047_v7  ;;  %2187 = vmatpush1.bf16.msra.mxu1 %v3051_v12 }
  0x5f   :  { %2157 = vmatprep.subr.bf16.mxu0 %v3058_v17  ;;  %2189 = vmatprep.subr.bf16.mxu1 %v3062_v21 }
  0x62   :  { %2159 = vmatpush1.bf16.msra.mxu0 %v3066_v26  ;;  %2191 = vmatpush1.bf16.msra.mxu1 %v3070_v30 }
  0x63   :  { %2161 = vmatprep.subr.bf16.mxu0 %v3077_v35  ;;  %2193 = vmatprep.subr.bf16.mxu1 %v3081_v40 }
  0x66   :  { %2163 = vmatpush1.bf16.msra.mxu0 %v3085_v44  ;;  %2195 = vmatpush1.bf16.msra.mxu1 %v3089_v48 }
  0x67   :  { %2165 = vmatprep.subr.bf16.mxu0 %v3096_v54  ;;  %2197 = vmatprep.subr.bf16.mxu1 %v3100_v58 }
  0x6a   :  { %2167 = vmatpush1.bf16.msra.mxu0 %v3104_v59  ;;  %2199 = vmatpush1.bf16.msra.mxu1 %v3108_v61 }
  0x6b   :  { %2201 = vmatprep.subr.bf16.mxu0 %v2970_v10  ;;  %2233 = vmatprep.subr.bf16.mxu1 %v2972_v11 }
 0x120   :  { %v514_v9 = vpop.f32.mrb[0].mxu0  ;;  %v585_v16 = vpop.f32.mrb[0].mxu1 }
 0x121   :  { %v2608_v14 = vadd.f32 %v514_v9, %v3158_v6  ;;  %v516_v18 = vpop.f32.mrb[1].mxu0  ;;  %v587_v22 = vpop.f32.mrb[1].mxu1  ;;  %v2624_v39 = vadd.f32 %v585_v16, %v3167_v34 }
 0x122   :  { %v2609_v20 = vadd.f32 %v516_v18, %v3160_v8  ;;  %v2625_v33 = vadd.f32 %v587_v22, %v3164_v29 }
 0x123   :  { %v1995_v25 = vmul.f32 -1.442695, %v2608_v14 }
 0x124   :  { %v1996_v27 = vmul.f32 -1.442695, %v2609_v20  ;;  %v1997_v38 = vmul.f32 -1.442695, %v2625_v33 }
 0x125   :  { %2682 = vpow2.f32 %v1995_v25 }
 0x126   :  { %2684 = vpow2.f32 %v1996_v27 }
 0x127   :  { %2686 = vpow2.f32 %v1997_v38 }
 0x128   :  { %2688 = vtanh.f32 %v2624_v39 }
 0x12f   :  { %v2683_v42 = vpop.eup %2682 }
 0x130   :  { %v2685_v43 = vpop.eup %2684  ;;  %v597_v46 = vadd.f32 1.0, %v2683_v42 }
 0x131   :  { %v603_v47 = vadd.f32 1.0, %v2685_v43  ;;  %v2687_v50 = vpop.eup %2686 }
 0x132   :  { %2690 = vrcp.f32 %v597_v46  ;;  %v2689_v51 = vpop.eup %2688  ;;  %v610_v62 = vadd.f32 1.0, %v2687_v50 }
 0x133   :  { %2692 = vrcp.f32 %v603_v47 }
 0x134   :  { %2694 = vrcp.f32 %v610_v62 }
 0x13c   :  { %v2691_v52 = vpop.eup %2690 }
 0x13d   :  { %v2693_v55 = vpop.eup %2692  ;;  %v614_v57 = vmul.f32 %v2691_v52, %v2689_v51 }
 0x13e   :  { %v613_v63 = vmul.f32 0.0, %v2693_v55  ;;  %v2695_v3 = vpop.eup %2694 }
 0x140   :  { %v3170_v2 = vadd.f32 %v614_v57, %v613_v63 }
 0x142   :  { %2696 = vtanh.f32 %v3170_v2 }
 0x14c   :  { %v2697_v5 = vpop.eup %2696 }
 0x14d   :  { %v617_v9 = vmul.f32 %v2697_v5, %v2695_v3 }
 0x14f   :  { %690 = vmatmul.mubr.f32.vlgmr.msra.gmra.mrb[2].mxu0 %v617_v9  ;;  %761 = vmatmul.mubr.f32.vlgmr.msra.gmra.mrb[2].mxu1 %v617_v9 }
 0x150   :  { %2203 = vmatpush1.bf16.msra.mxu0 %v2974_v15  ;;  %2235 = vmatpush1.bf16.msra.mxu1 %v2983_v19 }
 0x151   :  { %2205 = vmatprep.subr.bf16.mxu0 %v2986_v23  ;;  %2237 = vmatprep.subr.bf16.mxu1 %v2988_v24 }
 0x152   :  { %866 = vmatprep.mubr.f32.mxu0 %v2888_v0  ;;  %937 = vmatprep.mubr.f32.mxu1 %v2888_v0 }
 0x154   :  { %2207 = vmatpush1.bf16.msra.mxu0 %v2992_v28  ;;  %2239 = vmatpush1.bf16.msra.mxu1 %v2999_v32 }
 0x155   :  { %2209 = vmatprep.subr.bf16.mxu0 %v3003_v36  ;;  %2241 = vmatprep.subr.bf16.mxu1 %v3005_v37 }
 0x158   :  { %2211 = vmatpush1.bf16.msra.mxu0 %v3009_v41  ;;  %2243 = vmatpush1.bf16.msra.mxu1 %v3016_v45 }
 0x159   :  { %2213 = vmatprep.subr.bf16.mxu0 %v3020_v49  ;;  %2245 = vmatprep.subr.bf16.mxu1 %v3024_v53 }
 0x15c   :  { %2215 = vmatpush1.bf16.msra.mxu0 %v3028_v56  ;;  %2247 = vmatpush1.bf16.msra.mxu1 %v3032_v60 }
 0x15d   :  { %2217 = vmatprep.subr.bf16.mxu0 %v3039_v1  ;;  %2249 = vmatprep.subr.bf16.mxu1 %v3043_v4 }
 0x160   :  { %2219 = vmatpush1.bf16.msra.mxu0 %v3047_v7  ;;  %2251 = vmatpush1.bf16.msra.mxu1 %v3051_v12 }
 0x161   :  { %2221 = vmatprep.subr.bf16.mxu0 %v3058_v17  ;;  %2253 = vmatprep.subr.bf16.mxu1 %v3062_v21 }
 0x164   :  { %2223 = vmatpush1.bf16.msra.mxu0 %v3066_v26  ;;  %2255 = vmatpush1.bf16.msra.mxu1 %v3070_v30 }
 0x165   :  { %2225 = vmatprep.subr.bf16.mxu0 %v3077_v35  ;;  %2257 = vmatprep.subr.bf16.mxu1 %v3081_v40 }
 0x168   :  { %2227 = vmatpush1.bf16.msra.mxu0 %v3085_v44  ;;  %2259 = vmatpush1.bf16.msra.mxu1 %v3089_v48 }
 0x169   :  { %2229 = vmatprep.subr.bf16.mxu0 %v3096_v54  ;;  %2261 = vmatprep.subr.bf16.mxu1 %v3100_v58 }
 0x16c   :  { %2231 = vmatpush1.bf16.msra.mxu0 %v3104_v59  ;;  %2263 = vmatpush1.bf16.msra.mxu1 %v3108_v61 }
 0x16d   :  { %2265 = vmatprep.subr.bf16.mxu0 %v2970_v10  ;;  %2297 = vmatprep.subr.bf16.mxu1 %v2972_v11 }
 0x222   :  { %v691_v13 = vpop.f32.mrb[2].mxu0  ;;  %v762_v14 = vpop.f32.mrb[2].mxu1 }
 0x223   :  { %v2610_v16 = vadd.f32 %v691_v13, %v3158_v6  ;;  %v693_v18 = vpop.f32.mrb[3].mxu0  ;;  %v764_v20 = vpop.f32.mrb[3].mxu1  ;;  %v2626_v38 = vadd.f32 %v762_v14, %v3167_v34 }
 0x224   :  { %v2611_v22 = vadd.f32 %v693_v18, %v3160_v8  ;;  %v2627_v31 = vadd.f32 %v764_v20, %v3164_v29 }
 0x225   :  { %v1998_v25 = vmul.f32 -1.442695, %v2610_v16 }
 0x226   :  { %v1999_v27 = vmul.f32 -1.442695, %v2611_v22  ;;  %v2000_v33 = vmul.f32 -1.442695, %v2627_v31 }
 0x227   :  { %2698 = vpow2.f32 %v1998_v25 }
 0x228   :  { %2700 = vpow2.f32 %v1999_v27 }
 0x229   :  { %2702 = vpow2.f32 %v2000_v33 }
 0x22a   :  { %2704 = vtanh.f32 %v2626_v38 }
 0x231   :  { %v2699_v39 = vpop.eup %2698 }
 0x232   :  { %v2701_v42 = vpop.eup %2700  ;;  %v774_v43 = vadd.f32 1.0, %v2699_v39 }
 0x233   :  { %v780_v46 = vadd.f32 1.0, %v2701_v42  ;;  %v2703_v47 = vpop.eup %2702 }
 0x234   :  { %2706 = vrcp.f32 %v774_v43  ;;  %v2705_v50 = vpop.eup %2704  ;;  %v787_v57 = vadd.f32 1.0, %v2703_v47 }
 0x235   :  { %2708 = vrcp.f32 %v780_v46 }
 0x236   :  { %2710 = vrcp.f32 %v787_v57 }
 0x23e   :  { %v2707_v51 = vpop.eup %2706 }
 0x23f   :  { %v2709_v52 = vpop.eup %2708  ;;  %v791_v55 = vmul.f32 %v2707_v51, %v2705_v50 }
 0x240   :  { %v790_v62 = vmul.f32 %v2709_v52, %v3170_v2  ;;  %v2711_v3 = vpop.eup %2710 }
 0x242   :  { %v3212_v63 = vadd.f32 %v791_v55, %v790_v62 }
 0x244   :  { %2712 = vtanh.f32 %v3212_v63 }
 0x24e   :  { %v2713_v5 = vpop.eup %2712 }
 0x24f   :  { %v794_v9 = vmul.f32 %v2713_v5, %v2711_v3 }
 0x251   :  { %867 = vmatmul.mubr.f32.vlgmr.msra.gmra.mrb[4].mxu0 %v794_v9  ;;  %938 = vmatmul.mubr.f32.vlgmr.msra.gmra.mrb[4].mxu1 %v794_v9 }
 0x252   :  { %2267 = vmatpush1.bf16.msra.mxu0 %v2974_v15  ;;  %2299 = vmatpush1.bf16.msra.mxu1 %v2983_v19 }
 0x253   :  { %2269 = vmatprep.subr.bf16.mxu0 %v2986_v23  ;;  %2301 = vmatprep.subr.bf16.mxu1 %v2988_v24 }
 0x254   :  { %1043 = vmatprep.mubr.f32.mxu0 %v2888_v0  ;;  %1114 = vmatprep.mubr.f32.mxu1 %v2888_v0 }
 0x256   :  { %2271 = vmatpush1.bf16.msra.mxu0 %v2992_v28  ;;  %2303 = vmatpush1.bf16.msra.mxu1 %v2999_v32 }
 0x257   :  { %2273 = vmatprep.subr.bf16.mxu0 %v3003_v36  ;;  %2305 = vmatprep.subr.bf16.mxu1 %v3005_v37 }
 0x25a   :  { %2275 = vmatpush1.bf16.msra.mxu0 %v3009_v41  ;;  %2307 = vmatpush1.bf16.msra.mxu1 %v3016_v45 }
 0x25b   :  { %2277 = vmatprep.subr.bf16.mxu0 %v3020_v49  ;;  %2309 = vmatprep.subr.bf16.mxu1 %v3024_v53 }
 0x25e   :  { %2279 = vmatpush1.bf16.msra.mxu0 %v3028_v56  ;;  %2311 = vmatpush1.bf16.msra.mxu1 %v3032_v60 }
 0x25f   :  { %2281 = vmatprep.subr.bf16.mxu0 %v3039_v1  ;;  %2313 = vmatprep.subr.bf16.mxu1 %v3043_v4 }
 0x262   :  { %2283 = vmatpush1.bf16.msra.mxu0 %v3047_v7  ;;  %2315 = vmatpush1.bf16.msra.mxu1 %v3051_v12 }
 0x263   :  { %2285 = vmatprep.subr.bf16.mxu0 %v3058_v17  ;;  %2317 = vmatprep.subr.bf16.mxu1 %v3062_v21 }
 0x266   :  { %2287 = vmatpush1.bf16.msra.mxu0 %v3066_v26  ;;  %2319 = vmatpush1.bf16.msra.mxu1 %v3070_v30 }
 0x267   :  { %2289 = vmatprep.subr.bf16.mxu0 %v3077_v35  ;;  %2321 = vmatprep.subr.bf16.mxu1 %v3081_v40 }
 0x26a   :  { %2291 = vmatpush1.bf16.msra.mxu0 %v3085_v44  ;;  %2323 = vmatpush1.bf16.msra.mxu1 %v3089_v48 }
 0x26b   :  { %2293 = vmatprep.subr.bf16.mxu0 %v3096_v54  ;;  %2325 = vmatprep.subr.bf16.mxu1 %v3100_v58 }
 0x26e   :  { %2295 = vmatpush1.bf16.msra.mxu0 %v3104_v59  ;;  %2327 = vmatpush1.bf16.msra.mxu1 %v3108_v61 }
 0x26f   :  { %2329 = vmatprep.subr.bf16.mxu0 %v2970_v10  ;;  %2361 = vmatprep.subr.bf16.mxu1 %v2972_v11 }
 0x324   :  { %v868_v2 = vpop.f32.mrb[4].mxu0  ;;  %v939_v13 = vpop.f32.mrb[4].mxu1 }
 0x325   :  { %v2612_v14 = vadd.f32 %v868_v2, %v3158_v6  ;;  %v870_v16 = vpop.f32.mrb[5].mxu0  ;;  %v941_v18 = vpop.f32.mrb[5].mxu1  ;;  %v2628_v33 = vadd.f32 %v939_v13, %v3167_v34 }
 0x326   :  { %v2613_v20 = vadd.f32 %v870_v16, %v3160_v8  ;;  %v2629_v27 = vadd.f32 %v941_v18, %v3164_v29 }
 0x327   :  { %v2001_v22 = vmul.f32 -1.442695, %v2612_v14 }
 0x328   :  { %v2002_v25 = vmul.f32 -1.442695, %v2613_v20  ;;  %v2003_v31 = vmul.f32 -1.442695, %v2629_v27 }
 0x329   :  { %2714 = vpow2.f32 %v2001_v22 }
 0x32a   :  { %2716 = vpow2.f32 %v2002_v25 }
 0x32b   :  { %2718 = vpow2.f32 %v2003_v31 }
 0x32c   :  { %2720 = vtanh.f32 %v2628_v33 }
 0x333   :  { %v2715_v38 = vpop.eup %2714 }
 0x334   :  { %v2717_v39 = vpop.eup %2716  ;;  %v951_v42 = vadd.f32 1.0, %v2715_v38 }
 0x335   :  { %v957_v43 = vadd.f32 1.0, %v2717_v39  ;;  %v2719_v46 = vpop.eup %2718 }
 0x336   :  { %2722 = vrcp.f32 %v951_v42  ;;  %v2721_v47 = vpop.eup %2720  ;;  %v964_v55 = vadd.f32 1.0, %v2719_v46 }
 0x337   :  { %2724 = vrcp.f32 %v957_v43 }
 0x338   :  { %2726 = vrcp.f32 %v964_v55 }
 0x340   :  { %v2723_v50 = vpop.eup %2722 }
 0x341   :  { %v2725_v51 = vpop.eup %2724  ;;  %v968_v52 = vmul.f32 %v2723_v50, %v2721_v47 }
 0x342   :  { %v967_v57 = vmul.f32 %v2725_v51, %v3212_v63  ;;  %v2727_v3 = vpop.eup %2726 }
 0x344   :  { %v3254_v62 = vadd.f32 %v968_v52, %v967_v57 }
 0x346   :  { %2728 = vtanh.f32 %v3254_v62 }
 0x350   :  { %v2729_v5 = vpop.eup %2728 }
 0x351   :  { %v971_v9 = vmul.f32 %v2729_v5, %v2727_v3 }
 0x353   :  { %1044 = vmatmul.mubr.f32.vlgmr.msra.gmra.mrb[6].mxu0 %v971_v9  ;;  %1115 = vmatmul.mubr.f32.vlgmr.msra.gmra.mrb[6].mxu1 %v971_v9 }
 0x354   :  { %2331 = vmatpush1.bf16.msra.mxu0 %v2974_v15  ;;  %2363 = vmatpush1.bf16.msra.mxu1 %v2983_v19 }
 0x355   :  { %2333 = vmatprep.subr.bf16.mxu0 %v2986_v23  ;;  %2365 = vmatprep.subr.bf16.mxu1 %v2988_v24 }
 0x356   :  { %1220 = vmatprep.mubr.f32.mxu0 %v2888_v0  ;;  %1291 = vmatprep.mubr.f32.mxu1 %v2888_v0 }
 0x358   :  { %2335 = vmatpush1.bf16.msra.mxu0 %v2992_v28  ;;  %2367 = vmatpush1.bf16.msra.mxu1 %v2999_v32 }
 0x359   :  { %2337 = vmatprep.subr.bf16.mxu0 %v3003_v36  ;;  %2369 = vmatprep.subr.bf16.mxu1 %v3005_v37 }
 0x35c   :  { %2339 = vmatpush1.bf16.msra.mxu0 %v3009_v41  ;;  %2371 = vmatpush1.bf16.msra.mxu1 %v3016_v45 }
 0x35d   :  { %2341 = vmatprep.subr.bf16.mxu0 %v3020_v49  ;;  %2373 = vmatprep.subr.bf16.mxu1 %v3024_v53 }
 0x360   :  { %2343 = vmatpush1.bf16.msra.mxu0 %v3028_v56  ;;  %2375 = vmatpush1.bf16.msra.mxu1 %v3032_v60 }
 0x361   :  { %2345 = vmatprep.subr.bf16.mxu0 %v3039_v1  ;;  %2377 = vmatprep.subr.bf16.mxu1 %v3043_v4 }
 0x364   :  { %2347 = vmatpush1.bf16.msra.mxu0 %v3047_v7  ;;  %2379 = vmatpush1.bf16.msra.mxu1 %v3051_v12 }
 0x365   :  { %2349 = vmatprep.subr.bf16.mxu0 %v3058_v17  ;;  %2381 = vmatprep.subr.bf16.mxu1 %v3062_v21 }
 0x368   :  { %2351 = vmatpush1.bf16.msra.mxu0 %v3066_v26  ;;  %2383 = vmatpush1.bf16.msra.mxu1 %v3070_v30 }
 0x369   :  { %2353 = vmatprep.subr.bf16.mxu0 %v3077_v35  ;;  %2385 = vmatprep.subr.bf16.mxu1 %v3081_v40 }
 0x36c   :  { %2355 = vmatpush1.bf16.msra.mxu0 %v3085_v44  ;;  %2387 = vmatpush1.bf16.msra.mxu1 %v3089_v48 }
 0x36d   :  { %2357 = vmatprep.subr.bf16.mxu0 %v3096_v54  ;;  %2389 = vmatprep.subr.bf16.mxu1 %v3100_v58 }
 0x370   :  { %2359 = vmatpush1.bf16.msra.mxu0 %v3104_v59  ;;  %2391 = vmatpush1.bf16.msra.mxu1 %v3108_v61 }
 0x371   :  { %2393 = vmatprep.subr.bf16.mxu0 %v2970_v10  ;;  %2425 = vmatprep.subr.bf16.mxu1 %v2972_v11 }
 0x426   :  { %v1045_v63 = vpop.f32.mrb[6].mxu0  ;;  %v1116_v2 = vpop.f32.mrb[6].mxu1 }
 0x427   :  { %v2614_v13 = vadd.f32 %v1045_v63, %v3158_v6  ;;  %v1047_v14 = vpop.f32.mrb[7].mxu0  ;;  %v1118_v16 = vpop.f32.mrb[7].mxu1  ;;  %v2630_v31 = vadd.f32 %v1116_v2, %v3167_v34 }
 0x428   :  { %v2615_v18 = vadd.f32 %v1047_v14, %v3160_v8  ;;  %v2631_v25 = vadd.f32 %v1118_v16, %v3164_v29 }
 0x429   :  { %v2004_v20 = vmul.f32 -1.442695, %v2614_v13 }
 0x42a   :  { %v2005_v22 = vmul.f32 -1.442695, %v2615_v18  ;;  %v2006_v27 = vmul.f32 -1.442695, %v2631_v25 }
 0x42b   :  { %2730 = vpow2.f32 %v2004_v20 }
 0x42c   :  { %2732 = vpow2.f32 %v2005_v22 }
 0x42d   :  { %2734 = vpow2.f32 %v2006_v27 }
 0x42e   :  { %2736 = vtanh.f32 %v2630_v31 }
 0x435   :  { %v2731_v33 = vpop.eup %2730 }
 0x436   :  { %v2733_v38 = vpop.eup %2732  ;;  %v1128_v39 = vadd.f32 1.0, %v2731_v33 }
 0x437   :  { %v1134_v42 = vadd.f32 1.0, %v2733_v38  ;;  %v2735_v43 = vpop.eup %2734 }
 0x438   :  { %2738 = vrcp.f32 %v1128_v39  ;;  %v2737_v46 = vpop.eup %2736  ;;  %v1141_v52 = vadd.f32 1.0, %v2735_v43 }
 0x439   :  { %2740 = vrcp.f32 %v1134_v42 }
 0x43a   :  { %2742 = vrcp.f32 %v1141_v52 }
 0x442   :  { %v2739_v47 = vpop.eup %2738 }
 0x443   :  { %v2741_v50 = vpop.eup %2740  ;;  %v1145_v51 = vmul.f32 %v2739_v47, %v2737_v46 }
 0x444   :  { %v1144_v55 = vmul.f32 %v2741_v50, %v3254_v62  ;;  %v2743_v3 = vpop.eup %2742 }
 0x446   :  { %v3296_v57 = vadd.f32 %v1145_v51, %v1144_v55 }
 0x448   :  { %2744 = vtanh.f32 %v3296_v57 }
 0x452   :  { %v2745_v5 = vpop.eup %2744 }
 0x453   :  { %v1148_v9 = vmul.f32 %v2745_v5, %v2743_v3 }
 0x455   :  { %1221 = vmatmul.mubr.f32.vlgmr.msra.gmra.mrb[8].mxu0 %v1148_v9  ;;  %1292 = vmatmul.mubr.f32.vlgmr.msra.gmra.mrb[8].mxu1 %v1148_v9 }
 0x456   :  { %2395 = vmatpush1.bf16.msra.mxu0 %v2974_v15  ;;  %2427 = vmatpush1.bf16.msra.mxu1 %v2983_v19 }
 0x457   :  { %2397 = vmatprep.subr.bf16.mxu0 %v2986_v23  ;;  %2429 = vmatprep.subr.bf16.mxu1 %v2988_v24 }
 0x458   :  { %1397 = vmatprep.mubr.f32.mxu0 %v2888_v0  ;;  %1468 = vmatprep.mubr.f32.mxu1 %v2888_v0 }
 0x45a   :  { %2399 = vmatpush1.bf16.msra.mxu0 %v2992_v28  ;;  %2431 = vmatpush1.bf16.msra.mxu1 %v2999_v32 }
 0x45b   :  { %2401 = vmatprep.subr.bf16.mxu0 %v3003_v36  ;;  %2433 = vmatprep.subr.bf16.mxu1 %v3005_v37 }
 0x45e   :  { %2403 = vmatpush1.bf16.msra.mxu0 %v3009_v41  ;;  %2435 = vmatpush1.bf16.msra.mxu1 %v3016_v45 }
 0x45f   :  { %2405 = vmatprep.subr.bf16.mxu0 %v3020_v49  ;;  %2437 = vmatprep.subr.bf16.mxu1 %v3024_v53 }
 0x462   :  { %2407 = vmatpush1.bf16.msra.mxu0 %v3028_v56  ;;  %2439 = vmatpush1.bf16.msra.mxu1 %v3032_v60 }
 0x463   :  { %2409 = vmatprep.subr.bf16.mxu0 %v3039_v1  ;;  %2441 = vmatprep.subr.bf16.mxu1 %v3043_v4 }
 0x466   :  { %2411 = vmatpush1.bf16.msra.mxu0 %v3047_v7  ;;  %2443 = vmatpush1.bf16.msra.mxu1 %v3051_v12 }
 0x467   :  { %2413 = vmatprep.subr.bf16.mxu0 %v3058_v17  ;;  %2445 = vmatprep.subr.bf16.mxu1 %v3062_v21 }
 0x46a   :  { %2415 = vmatpush1.bf16.msra.mxu0 %v3066_v26  ;;  %2447 = vmatpush1.bf16.msra.mxu1 %v3070_v30 }
 0x46b   :  { %2417 = vmatprep.subr.bf16.mxu0 %v3077_v35  ;;  %2449 = vmatprep.subr.bf16.mxu1 %v3081_v40 }
 0x46e   :  { %2419 = vmatpush1.bf16.msra.mxu0 %v3085_v44  ;;  %2451 = vmatpush1.bf16.msra.mxu1 %v3089_v48 }
 0x46f   :  { %2421 = vmatprep.subr.bf16.mxu0 %v3096_v54  ;;  %2453 = vmatprep.subr.bf16.mxu1 %v3100_v58 }
 0x472   :  { %2423 = vmatpush1.bf16.msra.mxu0 %v3104_v59  ;;  %2455 = vmatpush1.bf16.msra.mxu1 %v3108_v61 }
 0x473   :  { %2457 = vmatprep.subr.bf16.mxu0 %v2970_v10  ;;  %2489 = vmatprep.subr.bf16.mxu1 %v2972_v11 }
 0x528   :  { %v1222_v62 = vpop.f32.mrb[8].mxu0  ;;  %v1293_v63 = vpop.f32.mrb[8].mxu1 }
 0x529   :  { %v2616_v2 = vadd.f32 %v1222_v62, %v3158_v6  ;;  %v1224_v13 = vpop.f32.mrb[9].mxu0  ;;  %v1295_v14 = vpop.f32.mrb[9].mxu1  ;;  %v2632_v27 = vadd.f32 %v1293_v63, %v3167_v34 }
 0x52a   :  { %v2617_v16 = vadd.f32 %v1224_v13, %v3160_v8  ;;  %v2633_v22 = vadd.f32 %v1295_v14, %v3164_v29 }
 0x52b   :  { %v2007_v18 = vmul.f32 -1.442695, %v2616_v2 }
 0x52c   :  { %v2008_v20 = vmul.f32 -1.442695, %v2617_v16  ;;  %v2009_v25 = vmul.f32 -1.442695, %v2633_v22 }
 0x52d   :  { %2746 = vpow2.f32 %v2007_v18 }
 0x52e   :  { %2748 = vpow2.f32 %v2008_v20 }
 0x52f   :  { %2750 = vpow2.f32 %v2009_v25 }
 0x530   :  { %2752 = vtanh.f32 %v2632_v27 }
 0x537   :  { %v2747_v31 = vpop.eup %2746 }
 0x538   :  { %v2749_v33 = vpop.eup %2748  ;;  %v1305_v38 = vadd.f32 1.0, %v2747_v31 }
 0x539   :  { %v1311_v39 = vadd.f32 1.0, %v2749_v33  ;;  %v2751_v42 = vpop.eup %2750 }
 0x53a   :  { %2754 = vrcp.f32 %v1305_v38  ;;  %v2753_v43 = vpop.eup %2752  ;;  %v1318_v51 = vadd.f32 1.0, %v2751_v42 }
 0x53b   :  { %2756 = vrcp.f32 %v1311_v39 }
 0x53c   :  { %2758 = vrcp.f32 %v1318_v51 }
 0x544   :  { %v2755_v46 = vpop.eup %2754 }
 0x545   :  { %v2757_v47 = vpop.eup %2756  ;;  %v1322_v50 = vmul.f32 %v2755_v46, %v2753_v43 }
 0x546   :  { %v1321_v52 = vmul.f32 %v2757_v47, %v3296_v57  ;;  %v2759_v3 = vpop.eup %2758 }
 0x548   :  { %v3338_v55 = vadd.f32 %v1322_v50, %v1321_v52 }
 0x54a   :  { %2760 = vtanh.f32 %v3338_v55 }
 0x554   :  { %v2761_v5 = vpop.eup %2760 }
 0x555   :  { %v1325_v9 = vmul.f32 %v2761_v5, %v2759_v3  ;;  %v1865_v5 = vld [vmem:[#allocation8 + $0x18] sm:$0xff] }
 0x557   :  { %1398 = vmatmul.mubr.f32.vlgmr.msra.gmra.mrb[10].mxu0 %v1325_v9  ;;  %1469 = vmatmul.mubr.f32.vlgmr.msra.gmra.mrb[10].mxu1 %v1325_v9 }
 0x558   :  { %2459 = vmatpush1.bf16.msra.mxu0 %v2974_v15  ;;  %2491 = vmatpush1.bf16.msra.mxu1 %v2983_v19 }
 0x559   :  { %2461 = vmatprep.subr.bf16.mxu0 %v2986_v23  ;;  %2493 = vmatprep.subr.bf16.mxu1 %v2988_v24 }
 0x55a   :  { %1574 = vmatprep.mubr.f32.mxu0 %v2888_v0  ;;  %1645 = vmatprep.mubr.f32.mxu1 %v2888_v0 }
 0x55c   :  { %2463 = vmatpush1.bf16.msra.mxu0 %v2992_v28  ;;  %2495 = vmatpush1.bf16.msra.mxu1 %v2999_v32 }
 0x55d   :  { %2465 = vmatprep.subr.bf16.mxu0 %v3003_v36  ;;  %2497 = vmatprep.subr.bf16.mxu1 %v3005_v37 }
 0x560   :  { %2467 = vmatpush1.bf16.msra.mxu0 %v3009_v41  ;;  %2499 = vmatpush1.bf16.msra.mxu1 %v3016_v45 }
 0x561   :  { %2469 = vmatprep.subr.bf16.mxu0 %v3020_v49  ;;  %2501 = vmatprep.subr.bf16.mxu1 %v3024_v53 }
 0x564   :  { %2471 = vmatpush1.bf16.msra.mxu0 %v3028_v56  ;;  %2503 = vmatpush1.bf16.msra.mxu1 %v3032_v60 }
 0x565   :  { %2473 = vmatprep.subr.bf16.mxu0 %v3039_v1  ;;  %2505 = vmatprep.subr.bf16.mxu1 %v3043_v4 }
 0x568   :  { %2475 = vmatpush1.bf16.msra.mxu0 %v3047_v7  ;;  %2507 = vmatpush1.bf16.msra.mxu1 %v3051_v12 }
 0x569   :  { %2477 = vmatprep.subr.bf16.mxu0 %v3058_v17  ;;  %2509 = vmatprep.subr.bf16.mxu1 %v3062_v21 }
 0x56c   :  { %2479 = vmatpush1.bf16.msra.mxu0 %v3066_v26  ;;  %2511 = vmatpush1.bf16.msra.mxu1 %v3070_v30 }
 0x56d   :  { %2481 = vmatprep.subr.bf16.mxu0 %v3077_v35  ;;  %2513 = vmatprep.subr.bf16.mxu1 %v3081_v40 }
 0x570   :  { %2483 = vmatpush1.bf16.msra.mxu0 %v3085_v44  ;;  %2515 = vmatpush1.bf16.msra.mxu1 %v3089_v48 }
 0x571   :  { %2485 = vmatprep.subr.bf16.mxu0 %v3096_v54  ;;  %2517 = vmatprep.subr.bf16.mxu1 %v3100_v58 }
 0x574   :  { %2487 = vmatpush1.bf16.msra.mxu0 %v3104_v59  ;;  %2519 = vmatpush1.bf16.msra.mxu1 %v3108_v61 }
 0x575   :  { %2521 = vmatprep.subr.bf16.mxu0 %v2970_v10  ;;  %2553 = vmatprep.subr.bf16.mxu1 %v2972_v11 }
 0x62a   :  { %v1399_v57 = vpop.f32.mrb[10].mxu0  ;;  %v1470_v62 = vpop.f32.mrb[10].mxu1 }
 0x62b   :  { %v2618_v63 = vadd.f32 %v1399_v57, %v3158_v6  ;;  %v1401_v2 = vpop.f32.mrb[11].mxu0  ;;  %v1472_v13 = vpop.f32.mrb[11].mxu1  ;;  %v2634_v25 = vadd.f32 %v1470_v62, %v3167_v34  ;;  %v1866_v57 = vld [vmem:[#allocation8 + $0x20] sm:$0xff]  ;;  %v1867_v62 = vld [vmem:[#allocation8 + $0x28] sm:$0xff] }
 0x62c   :  { %v2619_v14 = vadd.f32 %v1401_v2, %v3160_v8  ;;  %v2635_v20 = vadd.f32 %v1472_v13, %v3164_v29  ;;  %v1868_v2 = vld [vmem:[#allocation8 + $0x30] sm:$0xff]  ;;  %v1869_v13 = vld [vmem:[#allocation8 + $0x38] sm:$0xff] }
 0x62d   :  { %v2010_v16 = vmul.f32 -1.442695, %v2618_v63  ;;  %v2591_v63 = vpack.c.bf16 %v1867_v62, %v1866_v57 }
 0x62e   :  { %v2011_v18 = vmul.f32 -1.442695, %v2619_v14  ;;  %v2012_v22 = vmul.f32 -1.442695, %v2635_v20  ;;  %v2594_v14 = vpack.c.bf16 %v1869_v13, %v1868_v2 }
 0x62f   :  { %2762 = vpow2.f32 %v2010_v16  ;;  %v1870_v16 = vld [vmem:[#allocation8 + $0x40] sm:$0xff] }
 0x630   :  { %2764 = vpow2.f32 %v2011_v18  ;;  %v1871_v18 = vld [vmem:[#allocation8 + $0x48] sm:$0xff] }
 0x631   :  { %2766 = vpow2.f32 %v2012_v22  ;;  %v2597_v20 = vpack.c.bf16 %v1871_v18, %v1870_v16  ;;  %v1872_v22 = vld [vmem:[#allocation8 + $0x50] sm:$0xff] }
 0x632   :  { %2768 = vtanh.f32 %v2634_v25  ;;  %v1873_v25 = vld [vmem:[#allocation8 + $0x58] sm:$0xff] }
 0x639   :  { %v2763_v10 = vpop.eup %2762 }
 0x63a   :  { %v2765_v27 = vpop.eup %2764  ;;  %v1482_v11 = vadd.f32 1.0, %v2763_v10  ;;  %v1874_v10 = vld [vmem:[#allocation8 + $0x60] sm:$0xff] }
 0x63b   :  { %v1488_v31 = vadd.f32 1.0, %v2765_v27  ;;  %v2767_v33 = vpop.eup %2766  ;;  %v2600_v27 = vpack.c.bf16 %v1873_v25, %v1872_v22 }
 0x63c   :  { %2770 = vrcp.f32 %v1482_v11  ;;  %v2769_v38 = vpop.eup %2768  ;;  %v1495_v46 = vadd.f32 1.0, %v2767_v33  ;;  %v1875_v11 = vld [vmem:[#allocation8 + $0x68] sm:$0xff]  ;;  %v1876_v33 = vld [vmem:[#allocation8 + $0x70] sm:$0xff] }
 0x63d   :  { %2772 = vrcp.f32 %v1488_v31  ;;  %v2603_v31 = vpack.c.bf16 %v1875_v11, %v1874_v10 }
 0x63e   :  { %2774 = vrcp.f32 %v1495_v46 }
 0x646   :  { %v2771_v39 = vpop.eup %2770 }
 0x647   :  { %v2773_v42 = vpop.eup %2772  ;;  %v1499_v43 = vmul.f32 %v2771_v39, %v2769_v38  ;;  %v1877_v38 = vld [vmem:[#allocation8 + $0x78] sm:$0xff] }
 0x648   :  { %v1498_v47 = vmul.f32 %v2773_v42, %v3338_v55  ;;  %v2775_v51 = vpop.eup %2774  ;;  %v1864_v55 = vld [vmem:[#allocation8 + $0x10] sm:$0xff]  ;;  %v2606_v39 = vpack.c.bf16 %v1877_v38, %v1876_v33 }
 0x649   :  { %v2588_v9 = vpack.c.bf16 %v1865_v5, %v1864_v55 }
 0x64a   :  { %v3380_v50 = vadd.f32 %v1499_v43, %v1498_v47 }
 0x64c   :  { %2776 = vtanh.f32 %v3380_v50 }
 0x656   :  { %v2777_v52 = vpop.eup %2776 }
 0x657   :  { %v1502_v3 = vmul.f32 %v2777_v52, %v2775_v51 }
 0x659   :  { %1575 = vmatmul.mubr.f32.vlgmr.msra.gmra.mrb[12].mxu0 %v1502_v3  ;;  %1646 = vmatmul.mubr.f32.vlgmr.msra.gmra.mrb[12].mxu1 %v1502_v3 }
 0x65a   :  { %2523 = vmatpush1.bf16.msra.mxu0 %v2974_v15  ;;  %2555 = vmatpush1.bf16.msra.mxu1 %v2983_v19 }
 0x65b   :  { %2525 = vmatprep.subr.bf16.mxu0 %v2986_v23  ;;  %2557 = vmatprep.subr.bf16.mxu1 %v2988_v24 }
 0x65c   :  { %1751 = vmatprep.mubr.f32.mxu0 %v2888_v0  ;;  %1822 = vmatprep.mubr.f32.mxu1 %v2888_v0 }
 0x65e   :  { %2527 = vmatpush1.bf16.msra.mxu0 %v2992_v28  ;;  %2559 = vmatpush1.bf16.msra.mxu1 %v2999_v32 }
 0x65f   :  { %2529 = vmatprep.subr.bf16.mxu0 %v3003_v36  ;;  %2561 = vmatprep.subr.bf16.mxu1 %v3005_v37 }
 0x662   :  { %2531 = vmatpush1.bf16.msra.mxu0 %v3009_v41  ;;  %2563 = vmatpush1.bf16.msra.mxu1 %v3016_v45 }
 0x663   :  { %2533 = vmatprep.subr.bf16.mxu0 %v3020_v49  ;;  %2565 = vmatprep.subr.bf16.mxu1 %v3024_v53 }
 0x666   :  { %2535 = vmatpush1.bf16.msra.mxu0 %v3028_v56  ;;  %2567 = vmatpush1.bf16.msra.mxu1 %v3032_v60 }
 0x667   :  { %2537 = vmatprep.subr.bf16.mxu0 %v3039_v1  ;;  %2569 = vmatprep.subr.bf16.mxu1 %v3043_v4 }
 0x66a   :  { %2539 = vmatpush1.bf16.msra.mxu0 %v3047_v7  ;;  %2571 = vmatpush1.bf16.msra.mxu1 %v3051_v12 }
 0x66b   :  { %2541 = vmatprep.subr.bf16.mxu0 %v3058_v17  ;;  %2573 = vmatprep.subr.bf16.mxu1 %v3062_v21 }
 0x66e   :  { %2543 = vmatpush1.bf16.msra.mxu0 %v3066_v26  ;;  %2575 = vmatpush1.bf16.msra.mxu1 %v3070_v30 }
 0x66f   :  { %2545 = vmatprep.subr.bf16.mxu0 %v3077_v35  ;;  %2577 = vmatprep.subr.bf16.mxu1 %v3081_v40 }
 0x672   :  { %2547 = vmatpush1.bf16.msra.mxu0 %v3085_v44  ;;  %2579 = vmatpush1.bf16.msra.mxu1 %v3089_v48 }
 0x673   :  { %2549 = vmatprep.subr.bf16.mxu0 %v3096_v54  ;;  %2581 = vmatprep.subr.bf16.mxu1 %v3100_v58  ;;  %v1862_v54 = vld [vmem:[#allocation8] sm:$0xff]  ;;  %v1863_v58 = vld [vmem:[#allocation8 + $0x8] sm:$0xff] }
 0x676   :  { %2551 = vmatpush1.bf16.msra.mxu0 %v3104_v59  ;;  %2583 = vmatpush1.bf16.msra.mxu1 %v3108_v61  ;;  %v2585_v59 = vpack.c.bf16 %v1863_v58, %v1862_v54  ;;  %v2889_v61 = vmov 0.0|0.0  }
 0x677   :  { %2584 = vmatprep.subr.bf16.mxu0 %v2889_v61 }
 0x72c   :  { %v1576_v15 = vpop.f32.mrb[12].mxu0  ;;  %v1647_v19 = vpop.f32.mrb[12].mxu1 }
 0x72d   :  { %v2620_v23 = vadd.f32 %v1576_v15, %v3158_v6  ;;  %v1578_v24 = vpop.f32.mrb[13].mxu0  ;;  %v1649_v28 = vpop.f32.mrb[13].mxu1  ;;  %v2636_v49 = vadd.f32 %v1647_v19, %v3167_v34 }
 0x72e   :  { %v2621_v32 = vadd.f32 %v1578_v24, %v3160_v8  ;;  %v2637_v41 = vadd.f32 %v1649_v28, %v3164_v29 }
 0x72f   :  { %v2013_v36 = vmul.f32 -1.442695, %v2620_v23 }
 0x730   :  { %v2014_v37 = vmul.f32 -1.442695, %v2621_v32  ;;  %v2015_v45 = vmul.f32 -1.442695, %v2637_v41 }
 0x731   :  { %2778 = vpow2.f32 %v2013_v36 }
 0x732   :  { %2780 = vpow2.f32 %v2014_v37 }
 0x733   :  { %2782 = vpow2.f32 %v2015_v45 }
 0x734   :  { %2784 = vtanh.f32 %v2636_v49 }
 0x73b   :  { %v2779_v53 = vpop.eup %2778 }
 0x73c   :  { %v2781_v56 = vpop.eup %2780  ;;  %v1659_v60 = vadd.f32 1.0, %v2779_v53 }
 0x73d   :  { %v1665_v1 = vadd.f32 1.0, %v2781_v56  ;;  %v2783_v4 = vpop.eup %2782 }
 0x73e   :  { %2786 = vrcp.f32 %v1659_v60  ;;  %v2785_v7 = vpop.eup %2784  ;;  %v1672_v26 = vadd.f32 1.0, %v2783_v4  ;;  %v2019_v60 = vld [vmem:[%s3449_s5] ss:$0 sm:$0xff] }
 0x73f   :  { %2788 = vrcp.f32 %v1665_v1 }
 0x740   :  { %2790 = vrcp.f32 %v1672_v26 }
 0x748   :  { %v2787_v12 = vpop.eup %2786 }
 0x749   :  { %v2789_v17 = vpop.eup %2788  ;;  %v1676_v21 = vmul.f32 %v2787_v12, %v2785_v7 }
 0x74a   :  { %v1675_v30 = vmul.f32 %v2789_v17, %v3380_v50  ;;  %v2791_v40 = vpop.eup %2790 }
 0x74c   :  { %v3420_v35 = vadd.f32 %v1676_v21, %v1675_v30 }
 0x74e   :  { %2792 = vtanh.f32 %v3420_v35 }
 0x758   :  { %v2793_v44 = vpop.eup %2792 }
 0x759   :  { %v1679_v48 = vmul.f32 %v2793_v44, %v2791_v40 }
 0x75b   :  { %1752 = vmatmul.mubr.f32.vlgmr.msra.gmra.mrb[14].mxu0 %v1679_v48  ;;  %1823 = vmatmul.mubr.f32.vlgmr.msra.gmra.mrb[14].mxu1 %v1679_v48 }
 0x75c   :  { %2586 = vmatpush3.bf16.msra.mxu0 %v2585_v59  ;;  %2069 = vmatprep.mubr.msk.f32.mxu0 %vm2890_vm1, %v2888_v0 }
 0x75d   :  { %2587 = vmatprep.subr.bf16.mxu0 %v2889_v61 }
 0x760   :  { %2589 = vmatpush3.bf16.msra.mxu0 %v2588_v9 }
 0x761   :  { %2590 = vmatprep.subr.bf16.mxu0 %v2889_v61 }
 0x764   :  { %2592 = vmatpush3.bf16.msra.mxu0 %v2591_v63 }
 0x765   :  { %2593 = vmatprep.subr.bf16.mxu0 %v2889_v61 }
 0x768   :  { %2595 = vmatpush3.bf16.msra.mxu0 %v2594_v14 }
 0x769   :  { %2596 = vmatprep.subr.bf16.mxu0 %v2889_v61 }
 0x76c   :  { %2598 = vmatpush3.bf16.msra.mxu0 %v2597_v20 }
 0x76d   :  { %2599 = vmatprep.subr.bf16.mxu0 %v2889_v61 }
 0x770   :  { %2601 = vmatpush3.bf16.msra.mxu0 %v2600_v27 }
 0x771   :  { %2602 = vmatprep.subr.bf16.mxu0 %v2889_v61 }
 0x774   :  { %2604 = vmatpush3.bf16.msra.mxu0 %v2603_v31 }
 0x775   :  { %2605 = vmatprep.subr.bf16.mxu0 %v2889_v61 }
 0x778   :  { %2607 = vmatpush3.bf16.msra.mxu0 %v2606_v39 }
 0x82e   :  { %v1753_v42 = vpop.f32.mrb[14].mxu0  ;;  %v1824_v43 = vpop.f32.mrb[14].mxu1 }
 0x82f   :  { %v2622_v46 = vadd.f32 %v1753_v42, %v3158_v6  ;;  %v1755_v47 = vpop.f32.mrb[15].mxu0  ;;  %v1826_v50 = vpop.f32.mrb[15].mxu1  ;;  %v2638_v19 = vadd.f32 %v1824_v43, %v3167_v34 }
 0x830   :  { %v2623_v51 = vadd.f32 %v1755_v47, %v3160_v8  ;;  %v2639_v0 = vadd.f32 %v1826_v50, %v3164_v29 }
 0x831   :  { %v2016_v52 = vmul.f32 -1.442695, %v2622_v46 }
 0x832   :  { %v2017_v3 = vmul.f32 -1.442695, %v2623_v51  ;;  %v2018_v15 = vmul.f32 -1.442695, %v2639_v0 }
 0x833   :  { %2794 = vpow2.f32 %v2016_v52 }
 0x834   :  { %2796 = vpow2.f32 %v2017_v3 }
 0x835   :  { %2798 = vpow2.f32 %v2018_v15 }
 0x836   :  { %2800 = vtanh.f32 %v2638_v19 }
 0x83d   :  { %v2795_v23 = vpop.eup %2794 }
 0x83e   :  { %v2797_v24 = vpop.eup %2796  ;;  %v1836_v28 = vadd.f32 1.0, %v2795_v23 }
 0x83f   :  { %v1842_v32 = vadd.f32 1.0, %v2797_v24  ;;  %v2799_v6 = vpop.eup %2798 }
 0x840   :  { %2802 = vrcp.f32 %v1836_v28  ;;  %v2801_v36 = vpop.eup %2800  ;;  %v1849_v45 = vadd.f32 1.0, %v2799_v6 }
 0x841   :  { %2804 = vrcp.f32 %v1842_v32 }
 0x842   :  { %2806 = vrcp.f32 %v1849_v45 }
 0x84a   :  { %v2803_v8 = vpop.eup %2802 }
 0x84b   :  { %v2805_v37 = vpop.eup %2804  ;;  %v1853_v41 = vmul.f32 %v2803_v8, %v2801_v36 }
 0x84c   :  { %v1852_v49 = vmul.f32 %v2805_v37, %v3420_v35  ;;  %v2807_v34 = vpop.eup %2806 }
 0x84e   :  { %v1854_v29 = vadd.f32 %v1853_v41, %v1852_v49 }
 0x850   :  { %2808 = vtanh.f32 %v1854_v29 }
 0x85a   :  { %v2809_v53 = vpop.eup %2808 }
 0x85b   :  { %v1856_v56 = vmul.f32 %v2809_v53, %v2807_v34 }
 0x85d   :  { %2070 = vmatmul.mubr.f32.vlgmr.msra.gmra.mrb[16].mxu0 %v1856_v56 }
 0x930   :  { %v1951_v1 = vpop.f32.mrb[16].mxu0 }
 0x931   :  { %v1952_v4 = vadd.f32 %v2019_v60, %v1951_v1  ;;  %v2071_v7 = vpop.f32.mrb[17].mxu0 }
 0x933   :  { %1955 = vst [vmem:[#allocation10] sm:$0xff] %v1952_v4 }
 0x934   :  { %2865 = shalt.err (!%p2862_p6)
}
 0x935   :  { %s2866_s28 = scalar_lea.hbm %s3450_s6, 128 }
 0x936   :  { %p2867_p7 = scmp.ne.s32.totalorder %s3450_s6, %s2866_s28  ;;  %p2870_p8 = scmp.lt.u32.totalorder %s2866_s28, %s3450_s6 }
 0x938   :  { %p2872_p9 = pnand %p2870_p8, %p2867_p7 }
 0x93a   :  { %2875 = shalt.err (!%p2872_p9)
}
 0x93b   :  { %1965 = dma.vmem_to_hbm [thread:$0]  %s1963_s24, 128, %s3450_s6, [#allocation7]  }
 0x93c   :  { %2880 = dma.done.wait [#allocation7], 128  }
 0x93d   :  { %2881 = vsyncadd [#allocation7], 4294967168 }
 0x93e   :  { %1969 = vsyncpa [#allocation6], 1 }
 0x93f   :  { %1970 = vsyncpa [#allocation9], 1 }
 0x940   :  { %1971 = vsyncpa [#allocation7], 1 }

</bundles_post_ra>
